<compile_context>
chip_gen: v7x
topology: tpu7x:2x2x1
jax: 0.10.0
libtpu: 0.0.40
codegen_flags: <defaults>
</compile_context>

<pallas_src>
import functools

import jax
import jax.numpy as jnp
from jax import lax
from jax.experimental import pallas as pl
from jax.experimental.pallas import tpu as pltpu


def _round_up(n, m):
    return ((n + m - 1) // m) * m


def _make_kernel(rb, compute_dtype):
    """Builds the per-batch-tile kernel.

    Ref layout:
      b2_ref : (1, 1)   fc2 bias (SMEM scalar)
      x_ref  : (BT, F)  raw input rows (BN folded into A/C)
      a_ref  : (H, F)   A[h,i]  = rstd_i*gamma_i*w1_h              (compute_dtype)
      c_ref  : (H, F)   C[h,i]  = (beta_i - mean_i*rstd_i*gamma_i)*w1_h + b1_h
      w2_ref : (H, F)   fc2 weight, reshaped (F, H) then transposed
      o_ref  : (BT, 1)  sigmoid(logits)
    """

    def kernel(b2_ref, x_ref, a_ref, c_ref, w2_ref, o_ref):
        h_dim = a_ref.shape[0]
        bt = x_ref.shape[0]
        nb = bt // rb
        b2 = b2_ref[0, 0]

        def sub_block(r, carry):
            row0 = pl.multiple_of(r * rb, rb)
            # x sub-tile stays live in vregs across the whole hidden loop.
            x = x_ref[pl.ds(row0, rb), :].astype(compute_dtype)      # (rb, F)

            # h = 0 seeds the accumulator (no zeros + extra add pass).
            t0 = jnp.maximum(x * a_ref[0, :] + c_ref[0, :], 0.0)
            acc0 = (t0 * w2_ref[0, :]).astype(jnp.float32)           # f32 acc

            def h_body(h, acc):
                t = jnp.maximum(x * a_ref[h, :] + c_ref[h, :], 0.0)
                return acc + (t * w2_ref[h, :]).astype(jnp.float32)

            acc = lax.fori_loop(1, h_dim, h_body, acc0, unroll=True)

            # One cross-lane reduce (XLU) + sigmoid (EUP) per sub-block,
            # single small store per sub-block.
            logits = jnp.sum(acc, axis=-1, keepdims=True) + b2       # (rb, 1)
            o_ref[pl.ds(row0, rb), :] = jax.nn.sigmoid(logits)
            return carry

        lax.fori_loop(0, nb, sub_block, 0)

    return kernel


def nn_forward(x, gamma, beta, w1, b1, w2, b2, *, block_b=2048,
               compute_dtype=jnp.float32):
    """x: (B, F); params follow the PyTorch module. Returns (B,) float32.

    compute_dtype=jnp.bfloat16 packs the inner loop (recommended on v6e/v7x);
    accumulation and the logit/sigmoid path remain f32.
    """
    B, F = x.shape
    H = w1.shape[0]
    eps = 1e-5

    x = x.astype(jnp.float32)

    # --- BatchNorm1d training-mode statistics over the FULL batch (biased
    # variance), hoisted out of the kernel so the batch grid axis is
    # embarrassingly parallel. ---
    mean = jnp.mean(x, axis=0)
    var = jnp.mean(jnp.square(x - mean), axis=0)
    scale = gamma.astype(jnp.float32) * lax.rsqrt(var + eps)          # (F,)
    shift = beta.astype(jnp.float32) - mean * scale                   # (F,)

    # --- Fold BN + fc1 (+ fc2 weight layout) into (H, F) tables. ---
    w1f = w1.reshape(H).astype(jnp.float32)                           # fc1.weight (H, 1)
    b1f = b1.reshape(H).astype(jnp.float32)
    a_tab = (w1f[:, None] * scale[None, :]).astype(compute_dtype)     # (H, F)
    c_tab = (w1f[:, None] * shift[None, :] + b1f[:, None]).astype(compute_dtype)
    w2_tab = w2.reshape(F, H).T.astype(compute_dtype)                 # (H, F)
    b2_s = b2.reshape(1, 1).astype(jnp.float32)

    # --- Tiling: rb rows register-blocked in-kernel, bt rows per grid step.
    # No jnp.pad: the ragged last block is handled by Pallas partial-block
    # semantics (garbage rows are row-independent and their outputs masked). ---
    if F <= 256:
        rb = 32
    elif F <= 512:
        rb = 16
    else:
        rb = 8
    bt = max(rb, min(_round_up(block_b, rb), _round_up(B, rb)))
    nt = pl.cdiv(B, bt)

    kernel = _make_kernel(rb, compute_dtype)

    grid_spec = pltpu.PrefetchScalarGridSpec(
        num_scalar_prefetch=0,
        grid=(nt,),
        in_specs=[
            pl.BlockSpec(memory_space=pltpu.MemorySpace.SMEM),        # b2 scalar
            pl.BlockSpec((bt, F), lambda i: (i, 0)),                  # x tile
            pl.BlockSpec((H, F), lambda i: (0, 0)),                   # A  (resident)
            pl.BlockSpec((H, F), lambda i: (0, 0)),                   # C  (resident)
            pl.BlockSpec((H, F), lambda i: (0, 0)),                   # W2 (resident)
        ],
        out_specs=pl.BlockSpec((bt, 1), lambda i: (i, 0)),
    )

    tab_bytes = 3 * H * F * jnp.dtype(compute_dtype).itemsize
    cost = pl.CostEstimate(
        flops=5 * B * F * H,
        transcendentals=B,
        bytes_accessed=4 * B * F + 4 * B + tab_bytes,
    )

    out = pl.pallas_call(
        kernel,
        out_shape=jax.ShapeDtypeStruct((B, 1), jnp.float32),
        grid_spec=grid_spec,
        compiler_params=pltpu.CompilerParams(
            dimension_semantics=("parallel",)),                       # megacore on v7x
        cost_estimate=cost,
    )(b2_s, x, a_tab, c_tab, w2_tab)

    return out.reshape(B)


def reference_forward(x, gamma, beta, w1, b1, w2, b2):
    """Pure-JAX reference mirroring the PyTorch forward."""
    B, F = x.shape
    mean = jnp.mean(x, axis=0)
    var = jnp.mean(jnp.square(x - mean), axis=0)
    x_bn = (x - mean) / jnp.sqrt(var + 1e-5) * gamma + beta
    xf = x_bn.reshape(-1, 1)                                  # (B*F, 1)
    h = jax.nn.relu(xf @ w1.T + b1).reshape(B, -1)            # (B, F*H)
    return jax.nn.sigmoid(h @ w2.T + b2).reshape(-1)          # (B,)


if __name__ == "__main__":
    def make_inputs(key, B, F, H):
        kx, kw1, kb1, kw2, kb2 = jax.random.split(key, 5)
        x = jax.random.normal(kx, (B, F), jnp.float32)
        gamma = jnp.ones((F,), jnp.float32)                          # bn.weight
        beta = jnp.zeros((F,), jnp.float32)                          # bn.bias
        w1 = jax.random.normal(kw1, (H, 1), jnp.float32) * 0.5       # fc1.weight
        b1 = jax.random.normal(kb1, (H,), jnp.float32) * 0.1         # fc1.bias
        w2 = jax.random.normal(kw2, (1, F * H), jnp.float32) * 0.05  # fc2.weight
        b2 = jax.random.normal(kb2, (1,), jnp.float32) * 0.1         # fc2.bias
        return x, gamma, beta, w1, b1, w2, b2

    fwd_f32 = jax.jit(nn_forward)
    fwd_bf16 = jax.jit(functools.partial(nn_forward, compute_dtype=jnp.bfloat16))

    # Small sanity check at the original toy shapes.
    args_small = make_inputs(jax.random.PRNGKey(0), 2, 16, 32)
    y = jax.block_until_ready(fwd_f32(*args_small))
    y_ref = jax.block_until_ready(reference_forward(*args_small))
    assert y.shape == (2,)
    assert jnp.allclose(y, y_ref, atol=1e-4, rtol=1e-4)

    # Multiple batch tiles + a ragged (unpadded, partial) last tile.
    args_big = make_inputs(jax.random.PRNGKey(1), 2050, 64, 32)
    y = jax.block_until_ready(fwd_f32(*args_big))
    y_ref = jax.block_until_ready(reference_forward(*args_big))
    assert y.shape == (2050,)
    assert jnp.allclose(y, y_ref, atol=1e-4, rtol=1e-4)

    # bf16 inner-loop path (packed VALU on v6e/v7x); f32 accumulation keeps it
    # close to the f32 reference under a relaxed tolerance.
    y16 = jax.block_until_ready(fwd_bf16(*args_big))
    assert y16.shape == (2050,)
    assert jnp.allclose(y16, y_ref, atol=5e-2, rtol=5e-2)

    print("KERNEL_OK")
</pallas_src>

<mosaic_0001>
module attributes {stable_mosaic.version = 11 : i64} {
  func.func @kernel(%arg0: i32, %arg1: memref<1x1xf32, #tpu.memory_space<smem>>, %arg2: memref<32x16xf32, #tpu.memory_space<vmem>>, %arg3: memref<32x16xf32, #tpu.memory_space<vmem>>, %arg4: memref<32x16xf32, #tpu.memory_space<vmem>>, %arg5: memref<32x16xf32, #tpu.memory_space<vmem>>, %arg6: memref<32x1xf32, #tpu.memory_space<vmem>>) attributes {dimension_semantics = [#tpu.dimension_semantics<parallel>], iteration_bounds = array<i64: 1>, scalar_prefetch = 0 : i64, scratch_operands = 0 : i64, tpu.core_type = #tpu.core_type<tc>, window_params = [{transform_indices = @transform_0, window_bounds = array<i64: 1, 1>}, {transform_indices = @transform_1, window_bounds = array<i64: 32, 16>}, {pipeline_mode = #tpu.pipeline_mode<synchronous>, transform_indices = @transform_2, window_bounds = array<i64: 32, 16>}, {pipeline_mode = #tpu.pipeline_mode<synchronous>, transform_indices = @transform_3, window_bounds = array<i64: 32, 16>}, {pipeline_mode = #tpu.pipeline_mode<synchronous>, transform_indices = @transform_4, window_bounds = array<i64: 32, 16>}, {transform_indices = @transform_5, window_bounds = array<i64: 32, 1>}]} {
    %c0 = arith.constant 0 : index
    %c0_0 = arith.constant 0 : index
    %0 = memref.load %arg1[%c0, %c0_0] : memref<1x1xf32, #tpu.memory_space<smem>>
    %c0_i32 = arith.constant 0 : i32
    %c32_i32 = arith.constant 32 : i32
    %1 = arith.muli %c0_i32, %c32_i32 : i32
    %2 = tpu.assume_multiple %1, 32 : i32
    %3 = arith.index_cast %2 : i32 to index
    %c0_1 = arith.constant 0 : index
    %4 = vector.load %arg2[%3, %c0_1] : memref<32x16xf32, #tpu.memory_space<vmem>>, vector<32x16xf32>
    %c0_2 = arith.constant 0 : index
    %c0_3 = arith.constant 0 : index
    %5 = vector.load %arg3[%c0_2, %c0_3] : memref<32x16xf32, #tpu.memory_space<vmem>>, vector<1x16xf32>
    %6 = vector.shape_cast %5 : vector<1x16xf32> to vector<16xf32>
    %7 = vector.shape_cast %6 : vector<16xf32> to vector<1x16xf32>
    %8 = vector.broadcast %7 : vector<1x16xf32> to vector<32x16xf32>
    %9 = arith.mulf %4, %8 : vector<32x16xf32>
    %c0_4 = arith.constant 0 : index
    %c0_5 = arith.constant 0 : index
    %10 = vector.load %arg4[%c0_4, %c0_5] : memref<32x16xf32, #tpu.memory_space<vmem>>, vector<1x16xf32>
    %11 = vector.shape_cast %10 : vector<1x16xf32> to vector<16xf32>
    %12 = vector.shape_cast %11 : vector<16xf32> to vector<1x16xf32>
    %13 = vector.broadcast %12 : vector<1x16xf32> to vector<32x16xf32>
    %14 = arith.addf %9, %13 : vector<32x16xf32>
    %cst = arith.constant 0.000000e+00 : f32
    %15 = vector.broadcast %cst : f32 to vector<32x16xf32>
    %16 = arith.maximumf %14, %15 : vector<32x16xf32>
    %c0_6 = arith.constant 0 : index
    %c0_7 = arith.constant 0 : index
    %17 = vector.load %arg5[%c0_6, %c0_7] : memref<32x16xf32, #tpu.memory_space<vmem>>, vector<1x16xf32>
    %18 = vector.shape_cast %17 : vector<1x16xf32> to vector<16xf32>
    %19 = vector.shape_cast %18 : vector<16xf32> to vector<1x16xf32>
    %20 = vector.broadcast %19 : vector<1x16xf32> to vector<32x16xf32>
    %21 = arith.mulf %16, %20 : vector<32x16xf32>
    %c1_i32 = arith.constant 1 : i32
    %22 = arith.index_cast %c1_i32 : i32 to index
    %c0_8 = arith.constant 0 : index
    %23 = vector.load %arg3[%22, %c0_8] : memref<32x16xf32, #tpu.memory_space<vmem>>, vector<1x16xf32>
    %24 = vector.shape_cast %23 : vector<1x16xf32> to vector<16xf32>
    %25 = vector.shape_cast %24 : vector<16xf32> to vector<1x16xf32>
    %26 = vector.broadcast %25 : vector<1x16xf32> to vector<32x16xf32>
    %27 = arith.mulf %4, %26 : vector<32x16xf32>
    %28 = arith.index_cast %c1_i32 : i32 to index
    %c0_9 = arith.constant 0 : index
    %29 = vector.load %arg4[%28, %c0_9] : memref<32x16xf32, #tpu.memory_space<vmem>>, vector<1x16xf32>
    %30 = vector.shape_cast %29 : vector<1x16xf32> to vector<16xf32>
    %31 = vector.shape_cast %30 : vector<16xf32> to vector<1x16xf32>
    %32 = vector.broadcast %31 : vector<1x16xf32> to vector<32x16xf32>
    %33 = arith.addf %27, %32 : vector<32x16xf32>
    %cst_10 = arith.constant 0.000000e+00 : f32
    %34 = vector.broadcast %cst_10 : f32 to vector<32x16xf32>
    %35 = arith.maximumf %33, %34 : vector<32x16xf32>
    %36 = arith.index_cast %c1_i32 : i32 to index
    %c0_11 = arith.constant 0 : index
    %37 = vector.load %arg5[%36, %c0_11] : memref<32x16xf32, #tpu.memory_space<vmem>>, vector<1x16xf32>
    %38 = vector.shape_cast %37 : vector<1x16xf32> to vector<16xf32>
    %39 = vector.shape_cast %38 : vector<16xf32> to vector<1x16xf32>
    %40 = vector.broadcast %39 : vector<1x16xf32> to vector<32x16xf32>
    %41 = arith.mulf %35, %40 : vector<32x16xf32>
    %42 = arith.addf %21, %41 : vector<32x16xf32>
    %c2_i32 = arith.constant 2 : i32
    %43 = arith.index_cast %c2_i32 : i32 to index
    %c0_12 = arith.constant 0 : index
    %44 = vector.load %arg3[%43, %c0_12] : memref<32x16xf32, #tpu.memory_space<vmem>>, vector<1x16xf32>
    %45 = vector.shape_cast %44 : vector<1x16xf32> to vector<16xf32>
    %46 = vector.shape_cast %45 : vector<16xf32> to vector<1x16xf32>
    %47 = vector.broadcast %46 : vector<1x16xf32> to vector<32x16xf32>
    %48 = arith.mulf %4, %47 : vector<32x16xf32>
    %49 = arith.index_cast %c2_i32 : i32 to index
    %c0_13 = arith.constant 0 : index
    %50 = vector.load %arg4[%49, %c0_13] : memref<32x16xf32, #tpu.memory_space<vmem>>, vector<1x16xf32>
    %51 = vector.shape_cast %50 : vector<1x16xf32> to vector<16xf32>
    %52 = vector.shape_cast %51 : vector<16xf32> to vector<1x16xf32>
    %53 = vector.broadcast %52 : vector<1x16xf32> to vector<32x16xf32>
    %54 = arith.addf %48, %53 : vector<32x16xf32>
    %cst_14 = arith.constant 0.000000e+00 : f32
    %55 = vector.broadcast %cst_14 : f32 to vector<32x16xf32>
    %56 = arith.maximumf %54, %55 : vector<32x16xf32>
    %57 = arith.index_cast %c2_i32 : i32 to index
    %c0_15 = arith.constant 0 : index
    %58 = vector.load %arg5[%57, %c0_15] : memref<32x16xf32, #tpu.memory_space<vmem>>, vector<1x16xf32>
    %59 = vector.shape_cast %58 : vector<1x16xf32> to vector<16xf32>
    %60 = vector.shape_cast %59 : vector<16xf32> to vector<1x16xf32>
    %61 = vector.broadcast %60 : vector<1x16xf32> to vector<32x16xf32>
    %62 = arith.mulf %56, %61 : vector<32x16xf32>
    %63 = arith.addf %42, %62 : vector<32x16xf32>
    %c3_i32 = arith.constant 3 : i32
    %64 = arith.index_cast %c3_i32 : i32 to index
    %c0_16 = arith.constant 0 : index
    %65 = vector.load %arg3[%64, %c0_16] : memref<32x16xf32, #tpu.memory_space<vmem>>, vector<1x16xf32>
    %66 = vector.shape_cast %65 : vector<1x16xf32> to vector<16xf32>
    %67 = vector.shape_cast %66 : vector<16xf32> to vector<1x16xf32>
    %68 = vector.broadcast %67 : vector<1x16xf32> to vector<32x16xf32>
    %69 = arith.mulf %4, %68 : vector<32x16xf32>
    %70 = arith.index_cast %c3_i32 : i32 to index
    %c0_17 = arith.constant 0 : index
    %71 = vector.load %arg4[%70, %c0_17] : memref<32x16xf32, #tpu.memory_space<vmem>>, vector<1x16xf32>
    %72 = vector.shape_cast %71 : vector<1x16xf32> to vector<16xf32>
    %73 = vector.shape_cast %72 : vector<16xf32> to vector<1x16xf32>
    %74 = vector.broadcast %73 : vector<1x16xf32> to vector<32x16xf32>
    %75 = arith.addf %69, %74 : vector<32x16xf32>
    %cst_18 = arith.constant 0.000000e+00 : f32
    %76 = vector.broadcast %cst_18 : f32 to vector<32x16xf32>
    %77 = arith.maximumf %75, %76 : vector<32x16xf32>
    %78 = arith.index_cast %c3_i32 : i32 to index
    %c0_19 = arith.constant 0 : index
    %79 = vector.load %arg5[%78, %c0_19] : memref<32x16xf32, #tpu.memory_space<vmem>>, vector<1x16xf32>
    %80 = vector.shape_cast %79 : vector<1x16xf32> to vector<16xf32>
    %81 = vector.shape_cast %80 : vector<16xf32> to vector<1x16xf32>
    %82 = vector.broadcast %81 : vector<1x16xf32> to vector<32x16xf32>
    %83 = arith.mulf %77, %82 : vector<32x16xf32>
    %84 = arith.addf %63, %83 : vector<32x16xf32>
    %c4_i32 = arith.constant 4 : i32
    %85 = arith.index_cast %c4_i32 : i32 to index
    %c0_20 = arith.constant 0 : index
    %86 = vector.load %arg3[%85, %c0_20] : memref<32x16xf32, #tpu.memory_space<vmem>>, vector<1x16xf32>
    %87 = vector.shape_cast %86 : vector<1x16xf32> to vector<16xf32>
    %88 = vector.shape_cast %87 : vector<16xf32> to vector<1x16xf32>
    %89 = vector.broadcast %88 : vector<1x16xf32> to vector<32x16xf32>
    %90 = arith.mulf %4, %89 : vector<32x16xf32>
    %91 = arith.index_cast %c4_i32 : i32 to index
    %c0_21 = arith.constant 0 : index
    %92 = vector.load %arg4[%91, %c0_21] : memref<32x16xf32, #tpu.memory_space<vmem>>, vector<1x16xf32>
    %93 = vector.shape_cast %92 : vector<1x16xf32> to vector<16xf32>
    %94 = vector.shape_cast %93 : vector<16xf32> to vector<1x16xf32>
    %95 = vector.broadcast %94 : vector<1x16xf32> to vector<32x16xf32>
    %96 = arith.addf %90, %95 : vector<32x16xf32>
    %cst_22 = arith.constant 0.000000e+00 : f32
    %97 = vector.broadcast %cst_22 : f32 to vector<32x16xf32>
    %98 = arith.maximumf %96, %97 : vector<32x16xf32>
    %99 = arith.index_cast %c4_i32 : i32 to index
    %c0_23 = arith.constant 0 : index
    %100 = vector.load %arg5[%99, %c0_23] : memref<32x16xf32, #tpu.memory_space<vmem>>, vector<1x16xf32>
    %101 = vector.shape_cast %100 : vector<1x16xf32> to vector<16xf32>
    %102 = vector.shape_cast %101 : vector<16xf32> to vector<1x16xf32>
    %103 = vector.broadcast %102 : vector<1x16xf32> to vector<32x16xf32>
    %104 = arith.mulf %98, %103 : vector<32x16xf32>
    %105 = arith.addf %84, %104 : vector<32x16xf32>
    %c5_i32 = arith.constant 5 : i32
    %106 = arith.index_cast %c5_i32 : i32 to index
    %c0_24 = arith.constant 0 : index
    %107 = vector.load %arg3[%106, %c0_24] : memref<32x16xf32, #tpu.memory_space<vmem>>, vector<1x16xf32>
    %108 = vector.shape_cast %107 : vector<1x16xf32> to vector<16xf32>
    %109 = vector.shape_cast %108 : vector<16xf32> to vector<1x16xf32>
    %110 = vector.broadcast %109 : vector<1x16xf32> to vector<32x16xf32>
    %111 = arith.mulf %4, %110 : vector<32x16xf32>
    %112 = arith.index_cast %c5_i32 : i32 to index
    %c0_25 = arith.constant 0 : index
    %113 = vector.load %arg4[%112, %c0_25] : memref<32x16xf32, #tpu.memory_space<vmem>>, vector<1x16xf32>
    %114 = vector.shape_cast %113 : vector<1x16xf32> to vector<16xf32>
    %115 = vector.shape_cast %114 : vector<16xf32> to vector<1x16xf32>
    %116 = vector.broadcast %115 : vector<1x16xf32> to vector<32x16xf32>
    %117 = arith.addf %111, %116 : vector<32x16xf32>
    %cst_26 = arith.constant 0.000000e+00 : f32
    %118 = vector.broadcast %cst_26 : f32 to vector<32x16xf32>
    %119 = arith.maximumf %117, %118 : vector<32x16xf32>
    %120 = arith.index_cast %c5_i32 : i32 to index
    %c0_27 = arith.constant 0 : index
    %121 = vector.load %arg5[%120, %c0_27] : memref<32x16xf32, #tpu.memory_space<vmem>>, vector<1x16xf32>
    %122 = vector.shape_cast %121 : vector<1x16xf32> to vector<16xf32>
    %123 = vector.shape_cast %122 : vector<16xf32> to vector<1x16xf32>
    %124 = vector.broadcast %123 : vector<1x16xf32> to vector<32x16xf32>
    %125 = arith.mulf %119, %124 : vector<32x16xf32>
    %126 = arith.addf %105, %125 : vector<32x16xf32>
    %c6_i32 = arith.constant 6 : i32
    %127 = arith.index_cast %c6_i32 : i32 to index
    %c0_28 = arith.constant 0 : index
    %128 = vector.load %arg3[%127, %c0_28] : memref<32x16xf32, #tpu.memory_space<vmem>>, vector<1x16xf32>
    %129 = vector.shape_cast %128 : vector<1x16xf32> to vector<16xf32>
    %130 = vector.shape_cast %129 : vector<16xf32> to vector<1x16xf32>
    %131 = vector.broadcast %130 : vector<1x16xf32> to vector<32x16xf32>
    %132 = arith.mulf %4, %131 : vector<32x16xf32>
    %133 = arith.index_cast %c6_i32 : i32 to index
    %c0_29 = arith.constant 0 : index
    %134 = vector.load %arg4[%133, %c0_29] : memref<32x16xf32, #tpu.memory_space<vmem>>, vector<1x16xf32>
    %135 = vector.shape_cast %134 : vector<1x16xf32> to vector<16xf32>
    %136 = vector.shape_cast %135 : vector<16xf32> to vector<1x16xf32>
    %137 = vector.broadcast %136 : vector<1x16xf32> to vector<32x16xf32>
    %138 = arith.addf %132, %137 : vector<32x16xf32>
    %cst_30 = arith.constant 0.000000e+00 : f32
    %139 = vector.broadcast %cst_30 : f32 to vector<32x16xf32>
    %140 = arith.maximumf %138, %139 : vector<32x16xf32>
    %141 = arith.index_cast %c6_i32 : i32 to index
    %c0_31 = arith.constant 0 : index
    %142 = vector.load %arg5[%141, %c0_31] : memref<32x16xf32, #tpu.memory_space<vmem>>, vector<1x16xf32>
    %143 = vector.shape_cast %142 : vector<1x16xf32> to vector<16xf32>
    %144 = vector.shape_cast %143 : vector<16xf32> to vector<1x16xf32>
    %145 = vector.broadcast %144 : vector<1x16xf32> to vector<32x16xf32>
    %146 = arith.mulf %140, %145 : vector<32x16xf32>
    %147 = arith.addf %126, %146 : vector<32x16xf32>
    %c7_i32 = arith.constant 7 : i32
    %148 = arith.index_cast %c7_i32 : i32 to index
    %c0_32 = arith.constant 0 : index
    %149 = vector.load %arg3[%148, %c0_32] : memref<32x16xf32, #tpu.memory_space<vmem>>, vector<1x16xf32>
    %150 = vector.shape_cast %149 : vector<1x16xf32> to vector<16xf32>
    %151 = vector.shape_cast %150 : vector<16xf32> to vector<1x16xf32>
    %152 = vector.broadcast %151 : vector<1x16xf32> to vector<32x16xf32>
    %153 = arith.mulf %4, %152 : vector<32x16xf32>
    %154 = arith.index_cast %c7_i32 : i32 to index
    %c0_33 = arith.constant 0 : index
    %155 = vector.load %arg4[%154, %c0_33] : memref<32x16xf32, #tpu.memory_space<vmem>>, vector<1x16xf32>
    %156 = vector.shape_cast %155 : vector<1x16xf32> to vector<16xf32>
    %157 = vector.shape_cast %156 : vector<16xf32> to vector<1x16xf32>
    %158 = vector.broadcast %157 : vector<1x16xf32> to vector<32x16xf32>
    %159 = arith.addf %153, %158 : vector<32x16xf32>
    %cst_34 = arith.constant 0.000000e+00 : f32
    %160 = vector.broadcast %cst_34 : f32 to vector<32x16xf32>
    %161 = arith.maximumf %159, %160 : vector<32x16xf32>
    %162 = arith.index_cast %c7_i32 : i32 to index
    %c0_35 = arith.constant 0 : index
    %163 = vector.load %arg5[%162, %c0_35] : memref<32x16xf32, #tpu.memory_space<vmem>>, vector<1x16xf32>
    %164 = vector.shape_cast %163 : vector<1x16xf32> to vector<16xf32>
    %165 = vector.shape_cast %164 : vector<16xf32> to vector<1x16xf32>
    %166 = vector.broadcast %165 : vector<1x16xf32> to vector<32x16xf32>
    %167 = arith.mulf %161, %166 : vector<32x16xf32>
    %168 = arith.addf %147, %167 : vector<32x16xf32>
    %c8_i32 = arith.constant 8 : i32
    %169 = arith.index_cast %c8_i32 : i32 to index
    %c0_36 = arith.constant 0 : index
    %170 = vector.load %arg3[%169, %c0_36] : memref<32x16xf32, #tpu.memory_space<vmem>>, vector<1x16xf32>
    %171 = vector.shape_cast %170 : vector<1x16xf32> to vector<16xf32>
    %172 = vector.shape_cast %171 : vector<16xf32> to vector<1x16xf32>
    %173 = vector.broadcast %172 : vector<1x16xf32> to vector<32x16xf32>
    %174 = arith.mulf %4, %173 : vector<32x16xf32>
    %175 = arith.index_cast %c8_i32 : i32 to index
    %c0_37 = arith.constant 0 : index
    %176 = vector.load %arg4[%175, %c0_37] : memref<32x16xf32, #tpu.memory_space<vmem>>, vector<1x16xf32>
    %177 = vector.shape_cast %176 : vector<1x16xf32> to vector<16xf32>
    %178 = vector.shape_cast %177 : vector<16xf32> to vector<1x16xf32>
    %179 = vector.broadcast %178 : vector<1x16xf32> to vector<32x16xf32>
    %180 = arith.addf %174, %179 : vector<32x16xf32>
    %cst_38 = arith.constant 0.000000e+00 : f32
    %181 = vector.broadcast %cst_38 : f32 to vector<32x16xf32>
    %182 = arith.maximumf %180, %181 : vector<32x16xf32>
    %183 = arith.index_cast %c8_i32 : i32 to index
    %c0_39 = arith.constant 0 : index
    %184 = vector.load %arg5[%183, %c0_39] : memref<32x16xf32, #tpu.memory_space<vmem>>, vector<1x16xf32>
    %185 = vector.shape_cast %184 : vector<1x16xf32> to vector<16xf32>
    %186 = vector.shape_cast %185 : vector<16xf32> to vector<1x16xf32>
    %187 = vector.broadcast %186 : vector<1x16xf32> to vector<32x16xf32>
    %188 = arith.mulf %182, %187 : vector<32x16xf32>
    %189 = arith.addf %168, %188 : vector<32x16xf32>
    %c9_i32 = arith.constant 9 : i32
    %190 = arith.index_cast %c9_i32 : i32 to index
    %c0_40 = arith.constant 0 : index
    %191 = vector.load %arg3[%190, %c0_40] : memref<32x16xf32, #tpu.memory_space<vmem>>, vector<1x16xf32>
    %192 = vector.shape_cast %191 : vector<1x16xf32> to vector<16xf32>
    %193 = vector.shape_cast %192 : vector<16xf32> to vector<1x16xf32>
    %194 = vector.broadcast %193 : vector<1x16xf32> to vector<32x16xf32>
    %195 = arith.mulf %4, %194 : vector<32x16xf32>
    %196 = arith.index_cast %c9_i32 : i32 to index
    %c0_41 = arith.constant 0 : index
    %197 = vector.load %arg4[%196, %c0_41] : memref<32x16xf32, #tpu.memory_space<vmem>>, vector<1x16xf32>
    %198 = vector.shape_cast %197 : vector<1x16xf32> to vector<16xf32>
    %199 = vector.shape_cast %198 : vector<16xf32> to vector<1x16xf32>
    %200 = vector.broadcast %199 : vector<1x16xf32> to vector<32x16xf32>
    %201 = arith.addf %195, %200 : vector<32x16xf32>
    %cst_42 = arith.constant 0.000000e+00 : f32
    %202 = vector.broadcast %cst_42 : f32 to vector<32x16xf32>
    %203 = arith.maximumf %201, %202 : vector<32x16xf32>
    %204 = arith.index_cast %c9_i32 : i32 to index
    %c0_43 = arith.constant 0 : index
    %205 = vector.load %arg5[%204, %c0_43] : memref<32x16xf32, #tpu.memory_space<vmem>>, vector<1x16xf32>
    %206 = vector.shape_cast %205 : vector<1x16xf32> to vector<16xf32>
    %207 = vector.shape_cast %206 : vector<16xf32> to vector<1x16xf32>
    %208 = vector.broadcast %207 : vector<1x16xf32> to vector<32x16xf32>
    %209 = arith.mulf %203, %208 : vector<32x16xf32>
    %210 = arith.addf %189, %209 : vector<32x16xf32>
    %c10_i32 = arith.constant 10 : i32
    %211 = arith.index_cast %c10_i32 : i32 to index
    %c0_44 = arith.constant 0 : index
    %212 = vector.load %arg3[%211, %c0_44] : memref<32x16xf32, #tpu.memory_space<vmem>>, vector<1x16xf32>
    %213 = vector.shape_cast %212 : vector<1x16xf32> to vector<16xf32>
    %214 = vector.shape_cast %213 : vector<16xf32> to vector<1x16xf32>
    %215 = vector.broadcast %214 : vector<1x16xf32> to vector<32x16xf32>
    %216 = arith.mulf %4, %215 : vector<32x16xf32>
    %217 = arith.index_cast %c10_i32 : i32 to index
    %c0_45 = arith.constant 0 : index
    %218 = vector.load %arg4[%217, %c0_45] : memref<32x16xf32, #tpu.memory_space<vmem>>, vector<1x16xf32>
    %219 = vector.shape_cast %218 : vector<1x16xf32> to vector<16xf32>
    %220 = vector.shape_cast %219 : vector<16xf32> to vector<1x16xf32>
    %221 = vector.broadcast %220 : vector<1x16xf32> to vector<32x16xf32>
    %222 = arith.addf %216, %221 : vector<32x16xf32>
    %cst_46 = arith.constant 0.000000e+00 : f32
    %223 = vector.broadcast %cst_46 : f32 to vector<32x16xf32>
    %224 = arith.maximumf %222, %223 : vector<32x16xf32>
    %225 = arith.index_cast %c10_i32 : i32 to index
    %c0_47 = arith.constant 0 : index
    %226 = vector.load %arg5[%225, %c0_47] : memref<32x16xf32, #tpu.memory_space<vmem>>, vector<1x16xf32>
    %227 = vector.shape_cast %226 : vector<1x16xf32> to vector<16xf32>
    %228 = vector.shape_cast %227 : vector<16xf32> to vector<1x16xf32>
    %229 = vector.broadcast %228 : vector<1x16xf32> to vector<32x16xf32>
    %230 = arith.mulf %224, %229 : vector<32x16xf32>
    %231 = arith.addf %210, %230 : vector<32x16xf32>
    %c11_i32 = arith.constant 11 : i32
    %232 = arith.index_cast %c11_i32 : i32 to index
    %c0_48 = arith.constant 0 : index
    %233 = vector.load %arg3[%232, %c0_48] : memref<32x16xf32, #tpu.memory_space<vmem>>, vector<1x16xf32>
    %234 = vector.shape_cast %233 : vector<1x16xf32> to vector<16xf32>
    %235 = vector.shape_cast %234 : vector<16xf32> to vector<1x16xf32>
    %236 = vector.broadcast %235 : vector<1x16xf32> to vector<32x16xf32>
    %237 = arith.mulf %4, %236 : vector<32x16xf32>
    %238 = arith.index_cast %c11_i32 : i32 to index
    %c0_49 = arith.constant 0 : index
    %239 = vector.load %arg4[%238, %c0_49] : memref<32x16xf32, #tpu.memory_space<vmem>>, vector<1x16xf32>
    %240 = vector.shape_cast %239 : vector<1x16xf32> to vector<16xf32>
    %241 = vector.shape_cast %240 : vector<16xf32> to vector<1x16xf32>
    %242 = vector.broadcast %241 : vector<1x16xf32> to vector<32x16xf32>
    %243 = arith.addf %237, %242 : vector<32x16xf32>
    %cst_50 = arith.constant 0.000000e+00 : f32
    %244 = vector.broadcast %cst_50 : f32 to vector<32x16xf32>
    %245 = arith.maximumf %243, %244 : vector<32x16xf32>
    %246 = arith.index_cast %c11_i32 : i32 to index
    %c0_51 = arith.constant 0 : index
    %247 = vector.load %arg5[%246, %c0_51] : memref<32x16xf32, #tpu.memory_space<vmem>>, vector<1x16xf32>
    %248 = vector.shape_cast %247 : vector<1x16xf32> to vector<16xf32>
    %249 = vector.shape_cast %248 : vector<16xf32> to vector<1x16xf32>
    %250 = vector.broadcast %249 : vector<1x16xf32> to vector<32x16xf32>
    %251 = arith.mulf %245, %250 : vector<32x16xf32>
    %252 = arith.addf %231, %251 : vector<32x16xf32>
    %c12_i32 = arith.constant 12 : i32
    %253 = arith.index_cast %c12_i32 : i32 to index
    %c0_52 = arith.constant 0 : index
    %254 = vector.load %arg3[%253, %c0_52] : memref<32x16xf32, #tpu.memory_space<vmem>>, vector<1x16xf32>
    %255 = vector.shape_cast %254 : vector<1x16xf32> to vector<16xf32>
    %256 = vector.shape_cast %255 : vector<16xf32> to vector<1x16xf32>
    %257 = vector.broadcast %256 : vector<1x16xf32> to vector<32x16xf32>
    %258 = arith.mulf %4, %257 : vector<32x16xf32>
    %259 = arith.index_cast %c12_i32 : i32 to index
    %c0_53 = arith.constant 0 : index
    %260 = vector.load %arg4[%259, %c0_53] : memref<32x16xf32, #tpu.memory_space<vmem>>, vector<1x16xf32>
    %261 = vector.shape_cast %260 : vector<1x16xf32> to vector<16xf32>
    %262 = vector.shape_cast %261 : vector<16xf32> to vector<1x16xf32>
    %263 = vector.broadcast %262 : vector<1x16xf32> to vector<32x16xf32>
    %264 = arith.addf %258, %263 : vector<32x16xf32>
    %cst_54 = arith.constant 0.000000e+00 : f32
    %265 = vector.broadcast %cst_54 : f32 to vector<32x16xf32>
    %266 = arith.maximumf %264, %265 : vector<32x16xf32>
    %267 = arith.index_cast %c12_i32 : i32 to index
    %c0_55 = arith.constant 0 : index
    %268 = vector.load %arg5[%267, %c0_55] : memref<32x16xf32, #tpu.memory_space<vmem>>, vector<1x16xf32>
    %269 = vector.shape_cast %268 : vector<1x16xf32> to vector<16xf32>
    %270 = vector.shape_cast %269 : vector<16xf32> to vector<1x16xf32>
    %271 = vector.broadcast %270 : vector<1x16xf32> to vector<32x16xf32>
    %272 = arith.mulf %266, %271 : vector<32x16xf32>
    %273 = arith.addf %252, %272 : vector<32x16xf32>
    %c13_i32 = arith.constant 13 : i32
    %274 = arith.index_cast %c13_i32 : i32 to index
    %c0_56 = arith.constant 0 : index
    %275 = vector.load %arg3[%274, %c0_56] : memref<32x16xf32, #tpu.memory_space<vmem>>, vector<1x16xf32>
    %276 = vector.shape_cast %275 : vector<1x16xf32> to vector<16xf32>
    %277 = vector.shape_cast %276 : vector<16xf32> to vector<1x16xf32>
    %278 = vector.broadcast %277 : vector<1x16xf32> to vector<32x16xf32>
    %279 = arith.mulf %4, %278 : vector<32x16xf32>
    %280 = arith.index_cast %c13_i32 : i32 to index
    %c0_57 = arith.constant 0 : index
    %281 = vector.load %arg4[%280, %c0_57] : memref<32x16xf32, #tpu.memory_space<vmem>>, vector<1x16xf32>
    %282 = vector.shape_cast %281 : vector<1x16xf32> to vector<16xf32>
    %283 = vector.shape_cast %282 : vector<16xf32> to vector<1x16xf32>
    %284 = vector.broadcast %283 : vector<1x16xf32> to vector<32x16xf32>
    %285 = arith.addf %279, %284 : vector<32x16xf32>
    %cst_58 = arith.constant 0.000000e+00 : f32
    %286 = vector.broadcast %cst_58 : f32 to vector<32x16xf32>
    %287 = arith.maximumf %285, %286 : vector<32x16xf32>
    %288 = arith.index_cast %c13_i32 : i32 to index
    %c0_59 = arith.constant 0 : index
    %289 = vector.load %arg5[%288, %c0_59] : memref<32x16xf32, #tpu.memory_space<vmem>>, vector<1x16xf32>
    %290 = vector.shape_cast %289 : vector<1x16xf32> to vector<16xf32>
    %291 = vector.shape_cast %290 : vector<16xf32> to vector<1x16xf32>
    %292 = vector.broadcast %291 : vector<1x16xf32> to vector<32x16xf32>
    %293 = arith.mulf %287, %292 : vector<32x16xf32>
    %294 = arith.addf %273, %293 : vector<32x16xf32>
    %c14_i32 = arith.constant 14 : i32
    %295 = arith.index_cast %c14_i32 : i32 to index
    %c0_60 = arith.constant 0 : index
    %296 = vector.load %arg3[%295, %c0_60] : memref<32x16xf32, #tpu.memory_space<vmem>>, vector<1x16xf32>
    %297 = vector.shape_cast %296 : vector<1x16xf32> to vector<16xf32>
    %298 = vector.shape_cast %297 : vector<16xf32> to vector<1x16xf32>
    %299 = vector.broadcast %298 : vector<1x16xf32> to vector<32x16xf32>
    %300 = arith.mulf %4, %299 : vector<32x16xf32>
    %301 = arith.index_cast %c14_i32 : i32 to index
    %c0_61 = arith.constant 0 : index
    %302 = vector.load %arg4[%301, %c0_61] : memref<32x16xf32, #tpu.memory_space<vmem>>, vector<1x16xf32>
    %303 = vector.shape_cast %302 : vector<1x16xf32> to vector<16xf32>
    %304 = vector.shape_cast %303 : vector<16xf32> to vector<1x16xf32>
    %305 = vector.broadcast %304 : vector<1x16xf32> to vector<32x16xf32>
    %306 = arith.addf %300, %305 : vector<32x16xf32>
    %cst_62 = arith.constant 0.000000e+00 : f32
    %307 = vector.broadcast %cst_62 : f32 to vector<32x16xf32>
    %308 = arith.maximumf %306, %307 : vector<32x16xf32>
    %309 = arith.index_cast %c14_i32 : i32 to index
    %c0_63 = arith.constant 0 : index
    %310 = vector.load %arg5[%309, %c0_63] : memref<32x16xf32, #tpu.memory_space<vmem>>, vector<1x16xf32>
    %311 = vector.shape_cast %310 : vector<1x16xf32> to vector<16xf32>
    %312 = vector.shape_cast %311 : vector<16xf32> to vector<1x16xf32>
    %313 = vector.broadcast %312 : vector<1x16xf32> to vector<32x16xf32>
    %314 = arith.mulf %308, %313 : vector<32x16xf32>
    %315 = arith.addf %294, %314 : vector<32x16xf32>
    %c15_i32 = arith.constant 15 : i32
    %316 = arith.index_cast %c15_i32 : i32 to index
    %c0_64 = arith.constant 0 : index
    %317 = vector.load %arg3[%316, %c0_64] : memref<32x16xf32, #tpu.memory_space<vmem>>, vector<1x16xf32>
    %318 = vector.shape_cast %317 : vector<1x16xf32> to vector<16xf32>
    %319 = vector.shape_cast %318 : vector<16xf32> to vector<1x16xf32>
    %320 = vector.broadcast %319 : vector<1x16xf32> to vector<32x16xf32>
    %321 = arith.mulf %4, %320 : vector<32x16xf32>
    %322 = arith.index_cast %c15_i32 : i32 to index
    %c0_65 = arith.constant 0 : index
    %323 = vector.load %arg4[%322, %c0_65] : memref<32x16xf32, #tpu.memory_space<vmem>>, vector<1x16xf32>
    %324 = vector.shape_cast %323 : vector<1x16xf32> to vector<16xf32>
    %325 = vector.shape_cast %324 : vector<16xf32> to vector<1x16xf32>
    %326 = vector.broadcast %325 : vector<1x16xf32> to vector<32x16xf32>
    %327 = arith.addf %321, %326 : vector<32x16xf32>
    %cst_66 = arith.constant 0.000000e+00 : f32
    %328 = vector.broadcast %cst_66 : f32 to vector<32x16xf32>
    %329 = arith.maximumf %327, %328 : vector<32x16xf32>
    %330 = arith.index_cast %c15_i32 : i32 to index
    %c0_67 = arith.constant 0 : index
    %331 = vector.load %arg5[%330, %c0_67] : memref<32x16xf32, #tpu.memory_space<vmem>>, vector<1x16xf32>
    %332 = vector.shape_cast %331 : vector<1x16xf32> to vector<16xf32>
    %333 = vector.shape_cast %332 : vector<16xf32> to vector<1x16xf32>
    %334 = vector.broadcast %333 : vector<1x16xf32> to vector<32x16xf32>
    %335 = arith.mulf %329, %334 : vector<32x16xf32>
    %336 = arith.addf %315, %335 : vector<32x16xf32>
    %c16_i32 = arith.constant 16 : i32
    %337 = arith.index_cast %c16_i32 : i32 to index
    %c0_68 = arith.constant 0 : index
    %338 = vector.load %arg3[%337, %c0_68] : memref<32x16xf32, #tpu.memory_space<vmem>>, vector<1x16xf32>
    %339 = vector.shape_cast %338 : vector<1x16xf32> to vector<16xf32>
    %340 = vector.shape_cast %339 : vector<16xf32> to vector<1x16xf32>
    %341 = vector.broadcast %340 : vector<1x16xf32> to vector<32x16xf32>
    %342 = arith.mulf %4, %341 : vector<32x16xf32>
    %343 = arith.index_cast %c16_i32 : i32 to index
    %c0_69 = arith.constant 0 : index
    %344 = vector.load %arg4[%343, %c0_69] : memref<32x16xf32, #tpu.memory_space<vmem>>, vector<1x16xf32>
    %345 = vector.shape_cast %344 : vector<1x16xf32> to vector<16xf32>
    %346 = vector.shape_cast %345 : vector<16xf32> to vector<1x16xf32>
    %347 = vector.broadcast %346 : vector<1x16xf32> to vector<32x16xf32>
    %348 = arith.addf %342, %347 : vector<32x16xf32>
    %cst_70 = arith.constant 0.000000e+00 : f32
    %349 = vector.broadcast %cst_70 : f32 to vector<32x16xf32>
    %350 = arith.maximumf %348, %349 : vector<32x16xf32>
    %351 = arith.index_cast %c16_i32 : i32 to index
    %c0_71 = arith.constant 0 : index
    %352 = vector.load %arg5[%351, %c0_71] : memref<32x16xf32, #tpu.memory_space<vmem>>, vector<1x16xf32>
    %353 = vector.shape_cast %352 : vector<1x16xf32> to vector<16xf32>
    %354 = vector.shape_cast %353 : vector<16xf32> to vector<1x16xf32>
    %355 = vector.broadcast %354 : vector<1x16xf32> to vector<32x16xf32>
    %356 = arith.mulf %350, %355 : vector<32x16xf32>
    %357 = arith.addf %336, %356 : vector<32x16xf32>
    %c17_i32 = arith.constant 17 : i32
    %358 = arith.index_cast %c17_i32 : i32 to index
    %c0_72 = arith.constant 0 : index
    %359 = vector.load %arg3[%358, %c0_72] : memref<32x16xf32, #tpu.memory_space<vmem>>, vector<1x16xf32>
    %360 = vector.shape_cast %359 : vector<1x16xf32> to vector<16xf32>
    %361 = vector.shape_cast %360 : vector<16xf32> to vector<1x16xf32>
    %362 = vector.broadcast %361 : vector<1x16xf32> to vector<32x16xf32>
    %363 = arith.mulf %4, %362 : vector<32x16xf32>
    %364 = arith.index_cast %c17_i32 : i32 to index
    %c0_73 = arith.constant 0 : index
    %365 = vector.load %arg4[%364, %c0_73] : memref<32x16xf32, #tpu.memory_space<vmem>>, vector<1x16xf32>
    %366 = vector.shape_cast %365 : vector<1x16xf32> to vector<16xf32>
    %367 = vector.shape_cast %366 : vector<16xf32> to vector<1x16xf32>
    %368 = vector.broadcast %367 : vector<1x16xf32> to vector<32x16xf32>
    %369 = arith.addf %363, %368 : vector<32x16xf32>
    %cst_74 = arith.constant 0.000000e+00 : f32
    %370 = vector.broadcast %cst_74 : f32 to vector<32x16xf32>
    %371 = arith.maximumf %369, %370 : vector<32x16xf32>
    %372 = arith.index_cast %c17_i32 : i32 to index
    %c0_75 = arith.constant 0 : index
    %373 = vector.load %arg5[%372, %c0_75] : memref<32x16xf32, #tpu.memory_space<vmem>>, vector<1x16xf32>
    %374 = vector.shape_cast %373 : vector<1x16xf32> to vector<16xf32>
    %375 = vector.shape_cast %374 : vector<16xf32> to vector<1x16xf32>
    %376 = vector.broadcast %375 : vector<1x16xf32> to vector<32x16xf32>
    %377 = arith.mulf %371, %376 : vector<32x16xf32>
    %378 = arith.addf %357, %377 : vector<32x16xf32>
    %c18_i32 = arith.constant 18 : i32
    %379 = arith.index_cast %c18_i32 : i32 to index
    %c0_76 = arith.constant 0 : index
    %380 = vector.load %arg3[%379, %c0_76] : memref<32x16xf32, #tpu.memory_space<vmem>>, vector<1x16xf32>
    %381 = vector.shape_cast %380 : vector<1x16xf32> to vector<16xf32>
    %382 = vector.shape_cast %381 : vector<16xf32> to vector<1x16xf32>
    %383 = vector.broadcast %382 : vector<1x16xf32> to vector<32x16xf32>
    %384 = arith.mulf %4, %383 : vector<32x16xf32>
    %385 = arith.index_cast %c18_i32 : i32 to index
    %c0_77 = arith.constant 0 : index
    %386 = vector.load %arg4[%385, %c0_77] : memref<32x16xf32, #tpu.memory_space<vmem>>, vector<1x16xf32>
    %387 = vector.shape_cast %386 : vector<1x16xf32> to vector<16xf32>
    %388 = vector.shape_cast %387 : vector<16xf32> to vector<1x16xf32>
    %389 = vector.broadcast %388 : vector<1x16xf32> to vector<32x16xf32>
    %390 = arith.addf %384, %389 : vector<32x16xf32>
    %cst_78 = arith.constant 0.000000e+00 : f32
    %391 = vector.broadcast %cst_78 : f32 to vector<32x16xf32>
    %392 = arith.maximumf %390, %391 : vector<32x16xf32>
    %393 = arith.index_cast %c18_i32 : i32 to index
    %c0_79 = arith.constant 0 : index
    %394 = vector.load %arg5[%393, %c0_79] : memref<32x16xf32, #tpu.memory_space<vmem>>, vector<1x16xf32>
    %395 = vector.shape_cast %394 : vector<1x16xf32> to vector<16xf32>
    %396 = vector.shape_cast %395 : vector<16xf32> to vector<1x16xf32>
    %397 = vector.broadcast %396 : vector<1x16xf32> to vector<32x16xf32>
    %398 = arith.mulf %392, %397 : vector<32x16xf32>
    %399 = arith.addf %378, %398 : vector<32x16xf32>
    %c19_i32 = arith.constant 19 : i32
    %400 = arith.index_cast %c19_i32 : i32 to index
    %c0_80 = arith.constant 0 : index
    %401 = vector.load %arg3[%400, %c0_80] : memref<32x16xf32, #tpu.memory_space<vmem>>, vector<1x16xf32>
    %402 = vector.shape_cast %401 : vector<1x16xf32> to vector<16xf32>
    %403 = vector.shape_cast %402 : vector<16xf32> to vector<1x16xf32>
    %404 = vector.broadcast %403 : vector<1x16xf32> to vector<32x16xf32>
    %405 = arith.mulf %4, %404 : vector<32x16xf32>
    %406 = arith.index_cast %c19_i32 : i32 to index
    %c0_81 = arith.constant 0 : index
    %407 = vector.load %arg4[%406, %c0_81] : memref<32x16xf32, #tpu.memory_space<vmem>>, vector<1x16xf32>
    %408 = vector.shape_cast %407 : vector<1x16xf32> to vector<16xf32>
    %409 = vector.shape_cast %408 : vector<16xf32> to vector<1x16xf32>
    %410 = vector.broadcast %409 : vector<1x16xf32> to vector<32x16xf32>
    %411 = arith.addf %405, %410 : vector<32x16xf32>
    %cst_82 = arith.constant 0.000000e+00 : f32
    %412 = vector.broadcast %cst_82 : f32 to vector<32x16xf32>
    %413 = arith.maximumf %411, %412 : vector<32x16xf32>
    %414 = arith.index_cast %c19_i32 : i32 to index
    %c0_83 = arith.constant 0 : index
    %415 = vector.load %arg5[%414, %c0_83] : memref<32x16xf32, #tpu.memory_space<vmem>>, vector<1x16xf32>
    %416 = vector.shape_cast %415 : vector<1x16xf32> to vector<16xf32>
    %417 = vector.shape_cast %416 : vector<16xf32> to vector<1x16xf32>
    %418 = vector.broadcast %417 : vector<1x16xf32> to vector<32x16xf32>
    %419 = arith.mulf %413, %418 : vector<32x16xf32>
    %420 = arith.addf %399, %419 : vector<32x16xf32>
    %c20_i32 = arith.constant 20 : i32
    %421 = arith.index_cast %c20_i32 : i32 to index
    %c0_84 = arith.constant 0 : index
    %422 = vector.load %arg3[%421, %c0_84] : memref<32x16xf32, #tpu.memory_space<vmem>>, vector<1x16xf32>
    %423 = vector.shape_cast %422 : vector<1x16xf32> to vector<16xf32>
    %424 = vector.shape_cast %423 : vector<16xf32> to vector<1x16xf32>
    %425 = vector.broadcast %424 : vector<1x16xf32> to vector<32x16xf32>
    %426 = arith.mulf %4, %425 : vector<32x16xf32>
    %427 = arith.index_cast %c20_i32 : i32 to index
    %c0_85 = arith.constant 0 : index
    %428 = vector.load %arg4[%427, %c0_85] : memref<32x16xf32, #tpu.memory_space<vmem>>, vector<1x16xf32>
    %429 = vector.shape_cast %428 : vector<1x16xf32> to vector<16xf32>
    %430 = vector.shape_cast %429 : vector<16xf32> to vector<1x16xf32>
    %431 = vector.broadcast %430 : vector<1x16xf32> to vector<32x16xf32>
    %432 = arith.addf %426, %431 : vector<32x16xf32>
    %cst_86 = arith.constant 0.000000e+00 : f32
    %433 = vector.broadcast %cst_86 : f32 to vector<32x16xf32>
    %434 = arith.maximumf %432, %433 : vector<32x16xf32>
    %435 = arith.index_cast %c20_i32 : i32 to index
    %c0_87 = arith.constant 0 : index
    %436 = vector.load %arg5[%435, %c0_87] : memref<32x16xf32, #tpu.memory_space<vmem>>, vector<1x16xf32>
    %437 = vector.shape_cast %436 : vector<1x16xf32> to vector<16xf32>
    %438 = vector.shape_cast %437 : vector<16xf32> to vector<1x16xf32>
    %439 = vector.broadcast %438 : vector<1x16xf32> to vector<32x16xf32>
    %440 = arith.mulf %434, %439 : vector<32x16xf32>
    %441 = arith.addf %420, %440 : vector<32x16xf32>
    %c21_i32 = arith.constant 21 : i32
    %442 = arith.index_cast %c21_i32 : i32 to index
    %c0_88 = arith.constant 0 : index
    %443 = vector.load %arg3[%442, %c0_88] : memref<32x16xf32, #tpu.memory_space<vmem>>, vector<1x16xf32>
    %444 = vector.shape_cast %443 : vector<1x16xf32> to vector<16xf32>
    %445 = vector.shape_cast %444 : vector<16xf32> to vector<1x16xf32>
    %446 = vector.broadcast %445 : vector<1x16xf32> to vector<32x16xf32>
    %447 = arith.mulf %4, %446 : vector<32x16xf32>
    %448 = arith.index_cast %c21_i32 : i32 to index
    %c0_89 = arith.constant 0 : index
    %449 = vector.load %arg4[%448, %c0_89] : memref<32x16xf32, #tpu.memory_space<vmem>>, vector<1x16xf32>
    %450 = vector.shape_cast %449 : vector<1x16xf32> to vector<16xf32>
    %451 = vector.shape_cast %450 : vector<16xf32> to vector<1x16xf32>
    %452 = vector.broadcast %451 : vector<1x16xf32> to vector<32x16xf32>
    %453 = arith.addf %447, %452 : vector<32x16xf32>
    %cst_90 = arith.constant 0.000000e+00 : f32
    %454 = vector.broadcast %cst_90 : f32 to vector<32x16xf32>
    %455 = arith.maximumf %453, %454 : vector<32x16xf32>
    %456 = arith.index_cast %c21_i32 : i32 to index
    %c0_91 = arith.constant 0 : index
    %457 = vector.load %arg5[%456, %c0_91] : memref<32x16xf32, #tpu.memory_space<vmem>>, vector<1x16xf32>
    %458 = vector.shape_cast %457 : vector<1x16xf32> to vector<16xf32>
    %459 = vector.shape_cast %458 : vector<16xf32> to vector<1x16xf32>
    %460 = vector.broadcast %459 : vector<1x16xf32> to vector<32x16xf32>
    %461 = arith.mulf %455, %460 : vector<32x16xf32>
    %462 = arith.addf %441, %461 : vector<32x16xf32>
    %c22_i32 = arith.constant 22 : i32
    %463 = arith.index_cast %c22_i32 : i32 to index
    %c0_92 = arith.constant 0 : index
    %464 = vector.load %arg3[%463, %c0_92] : memref<32x16xf32, #tpu.memory_space<vmem>>, vector<1x16xf32>
    %465 = vector.shape_cast %464 : vector<1x16xf32> to vector<16xf32>
    %466 = vector.shape_cast %465 : vector<16xf32> to vector<1x16xf32>
    %467 = vector.broadcast %466 : vector<1x16xf32> to vector<32x16xf32>
    %468 = arith.mulf %4, %467 : vector<32x16xf32>
    %469 = arith.index_cast %c22_i32 : i32 to index
    %c0_93 = arith.constant 0 : index
    %470 = vector.load %arg4[%469, %c0_93] : memref<32x16xf32, #tpu.memory_space<vmem>>, vector<1x16xf32>
    %471 = vector.shape_cast %470 : vector<1x16xf32> to vector<16xf32>
    %472 = vector.shape_cast %471 : vector<16xf32> to vector<1x16xf32>
    %473 = vector.broadcast %472 : vector<1x16xf32> to vector<32x16xf32>
    %474 = arith.addf %468, %473 : vector<32x16xf32>
    %cst_94 = arith.constant 0.000000e+00 : f32
    %475 = vector.broadcast %cst_94 : f32 to vector<32x16xf32>
    %476 = arith.maximumf %474, %475 : vector<32x16xf32>
    %477 = arith.index_cast %c22_i32 : i32 to index
    %c0_95 = arith.constant 0 : index
    %478 = vector.load %arg5[%477, %c0_95] : memref<32x16xf32, #tpu.memory_space<vmem>>, vector<1x16xf32>
    %479 = vector.shape_cast %478 : vector<1x16xf32> to vector<16xf32>
    %480 = vector.shape_cast %479 : vector<16xf32> to vector<1x16xf32>
    %481 = vector.broadcast %480 : vector<1x16xf32> to vector<32x16xf32>
    %482 = arith.mulf %476, %481 : vector<32x16xf32>
    %483 = arith.addf %462, %482 : vector<32x16xf32>
    %c23_i32 = arith.constant 23 : i32
    %484 = arith.index_cast %c23_i32 : i32 to index
    %c0_96 = arith.constant 0 : index
    %485 = vector.load %arg3[%484, %c0_96] : memref<32x16xf32, #tpu.memory_space<vmem>>, vector<1x16xf32>
    %486 = vector.shape_cast %485 : vector<1x16xf32> to vector<16xf32>
    %487 = vector.shape_cast %486 : vector<16xf32> to vector<1x16xf32>
    %488 = vector.broadcast %487 : vector<1x16xf32> to vector<32x16xf32>
    %489 = arith.mulf %4, %488 : vector<32x16xf32>
    %490 = arith.index_cast %c23_i32 : i32 to index
    %c0_97 = arith.constant 0 : index
    %491 = vector.load %arg4[%490, %c0_97] : memref<32x16xf32, #tpu.memory_space<vmem>>, vector<1x16xf32>
    %492 = vector.shape_cast %491 : vector<1x16xf32> to vector<16xf32>
    %493 = vector.shape_cast %492 : vector<16xf32> to vector<1x16xf32>
    %494 = vector.broadcast %493 : vector<1x16xf32> to vector<32x16xf32>
    %495 = arith.addf %489, %494 : vector<32x16xf32>
    %cst_98 = arith.constant 0.000000e+00 : f32
    %496 = vector.broadcast %cst_98 : f32 to vector<32x16xf32>
    %497 = arith.maximumf %495, %496 : vector<32x16xf32>
    %498 = arith.index_cast %c23_i32 : i32 to index
    %c0_99 = arith.constant 0 : index
    %499 = vector.load %arg5[%498, %c0_99] : memref<32x16xf32, #tpu.memory_space<vmem>>, vector<1x16xf32>
    %500 = vector.shape_cast %499 : vector<1x16xf32> to vector<16xf32>
    %501 = vector.shape_cast %500 : vector<16xf32> to vector<1x16xf32>
    %502 = vector.broadcast %501 : vector<1x16xf32> to vector<32x16xf32>
    %503 = arith.mulf %497, %502 : vector<32x16xf32>
    %504 = arith.addf %483, %503 : vector<32x16xf32>
    %c24_i32 = arith.constant 24 : i32
    %505 = arith.index_cast %c24_i32 : i32 to index
    %c0_100 = arith.constant 0 : index
    %506 = vector.load %arg3[%505, %c0_100] : memref<32x16xf32, #tpu.memory_space<vmem>>, vector<1x16xf32>
    %507 = vector.shape_cast %506 : vector<1x16xf32> to vector<16xf32>
    %508 = vector.shape_cast %507 : vector<16xf32> to vector<1x16xf32>
    %509 = vector.broadcast %508 : vector<1x16xf32> to vector<32x16xf32>
    %510 = arith.mulf %4, %509 : vector<32x16xf32>
    %511 = arith.index_cast %c24_i32 : i32 to index
    %c0_101 = arith.constant 0 : index
    %512 = vector.load %arg4[%511, %c0_101] : memref<32x16xf32, #tpu.memory_space<vmem>>, vector<1x16xf32>
    %513 = vector.shape_cast %512 : vector<1x16xf32> to vector<16xf32>
    %514 = vector.shape_cast %513 : vector<16xf32> to vector<1x16xf32>
    %515 = vector.broadcast %514 : vector<1x16xf32> to vector<32x16xf32>
    %516 = arith.addf %510, %515 : vector<32x16xf32>
    %cst_102 = arith.constant 0.000000e+00 : f32
    %517 = vector.broadcast %cst_102 : f32 to vector<32x16xf32>
    %518 = arith.maximumf %516, %517 : vector<32x16xf32>
    %519 = arith.index_cast %c24_i32 : i32 to index
    %c0_103 = arith.constant 0 : index
    %520 = vector.load %arg5[%519, %c0_103] : memref<32x16xf32, #tpu.memory_space<vmem>>, vector<1x16xf32>
    %521 = vector.shape_cast %520 : vector<1x16xf32> to vector<16xf32>
    %522 = vector.shape_cast %521 : vector<16xf32> to vector<1x16xf32>
    %523 = vector.broadcast %522 : vector<1x16xf32> to vector<32x16xf32>
    %524 = arith.mulf %518, %523 : vector<32x16xf32>
    %525 = arith.addf %504, %524 : vector<32x16xf32>
    %c25_i32 = arith.constant 25 : i32
    %526 = arith.index_cast %c25_i32 : i32 to index
    %c0_104 = arith.constant 0 : index
    %527 = vector.load %arg3[%526, %c0_104] : memref<32x16xf32, #tpu.memory_space<vmem>>, vector<1x16xf32>
    %528 = vector.shape_cast %527 : vector<1x16xf32> to vector<16xf32>
    %529 = vector.shape_cast %528 : vector<16xf32> to vector<1x16xf32>
    %530 = vector.broadcast %529 : vector<1x16xf32> to vector<32x16xf32>
    %531 = arith.mulf %4, %530 : vector<32x16xf32>
    %532 = arith.index_cast %c25_i32 : i32 to index
    %c0_105 = arith.constant 0 : index
    %533 = vector.load %arg4[%532, %c0_105] : memref<32x16xf32, #tpu.memory_space<vmem>>, vector<1x16xf32>
    %534 = vector.shape_cast %533 : vector<1x16xf32> to vector<16xf32>
    %535 = vector.shape_cast %534 : vector<16xf32> to vector<1x16xf32>
    %536 = vector.broadcast %535 : vector<1x16xf32> to vector<32x16xf32>
    %537 = arith.addf %531, %536 : vector<32x16xf32>
    %cst_106 = arith.constant 0.000000e+00 : f32
    %538 = vector.broadcast %cst_106 : f32 to vector<32x16xf32>
    %539 = arith.maximumf %537, %538 : vector<32x16xf32>
    %540 = arith.index_cast %c25_i32 : i32 to index
    %c0_107 = arith.constant 0 : index
    %541 = vector.load %arg5[%540, %c0_107] : memref<32x16xf32, #tpu.memory_space<vmem>>, vector<1x16xf32>
    %542 = vector.shape_cast %541 : vector<1x16xf32> to vector<16xf32>
    %543 = vector.shape_cast %542 : vector<16xf32> to vector<1x16xf32>
    %544 = vector.broadcast %543 : vector<1x16xf32> to vector<32x16xf32>
    %545 = arith.mulf %539, %544 : vector<32x16xf32>
    %546 = arith.addf %525, %545 : vector<32x16xf32>
    %c26_i32 = arith.constant 26 : i32
    %547 = arith.index_cast %c26_i32 : i32 to index
    %c0_108 = arith.constant 0 : index
    %548 = vector.load %arg3[%547, %c0_108] : memref<32x16xf32, #tpu.memory_space<vmem>>, vector<1x16xf32>
    %549 = vector.shape_cast %548 : vector<1x16xf32> to vector<16xf32>
    %550 = vector.shape_cast %549 : vector<16xf32> to vector<1x16xf32>
    %551 = vector.broadcast %550 : vector<1x16xf32> to vector<32x16xf32>
    %552 = arith.mulf %4, %551 : vector<32x16xf32>
    %553 = arith.index_cast %c26_i32 : i32 to index
    %c0_109 = arith.constant 0 : index
    %554 = vector.load %arg4[%553, %c0_109] : memref<32x16xf32, #tpu.memory_space<vmem>>, vector<1x16xf32>
    %555 = vector.shape_cast %554 : vector<1x16xf32> to vector<16xf32>
    %556 = vector.shape_cast %555 : vector<16xf32> to vector<1x16xf32>
    %557 = vector.broadcast %556 : vector<1x16xf32> to vector<32x16xf32>
    %558 = arith.addf %552, %557 : vector<32x16xf32>
    %cst_110 = arith.constant 0.000000e+00 : f32
    %559 = vector.broadcast %cst_110 : f32 to vector<32x16xf32>
    %560 = arith.maximumf %558, %559 : vector<32x16xf32>
    %561 = arith.index_cast %c26_i32 : i32 to index
    %c0_111 = arith.constant 0 : index
    %562 = vector.load %arg5[%561, %c0_111] : memref<32x16xf32, #tpu.memory_space<vmem>>, vector<1x16xf32>
    %563 = vector.shape_cast %562 : vector<1x16xf32> to vector<16xf32>
    %564 = vector.shape_cast %563 : vector<16xf32> to vector<1x16xf32>
    %565 = vector.broadcast %564 : vector<1x16xf32> to vector<32x16xf32>
    %566 = arith.mulf %560, %565 : vector<32x16xf32>
    %567 = arith.addf %546, %566 : vector<32x16xf32>
    %c27_i32 = arith.constant 27 : i32
    %568 = arith.index_cast %c27_i32 : i32 to index
    %c0_112 = arith.constant 0 : index
    %569 = vector.load %arg3[%568, %c0_112] : memref<32x16xf32, #tpu.memory_space<vmem>>, vector<1x16xf32>
    %570 = vector.shape_cast %569 : vector<1x16xf32> to vector<16xf32>
    %571 = vector.shape_cast %570 : vector<16xf32> to vector<1x16xf32>
    %572 = vector.broadcast %571 : vector<1x16xf32> to vector<32x16xf32>
    %573 = arith.mulf %4, %572 : vector<32x16xf32>
    %574 = arith.index_cast %c27_i32 : i32 to index
    %c0_113 = arith.constant 0 : index
    %575 = vector.load %arg4[%574, %c0_113] : memref<32x16xf32, #tpu.memory_space<vmem>>, vector<1x16xf32>
    %576 = vector.shape_cast %575 : vector<1x16xf32> to vector<16xf32>
    %577 = vector.shape_cast %576 : vector<16xf32> to vector<1x16xf32>
    %578 = vector.broadcast %577 : vector<1x16xf32> to vector<32x16xf32>
    %579 = arith.addf %573, %578 : vector<32x16xf32>
    %cst_114 = arith.constant 0.000000e+00 : f32
    %580 = vector.broadcast %cst_114 : f32 to vector<32x16xf32>
    %581 = arith.maximumf %579, %580 : vector<32x16xf32>
    %582 = arith.index_cast %c27_i32 : i32 to index
    %c0_115 = arith.constant 0 : index
    %583 = vector.load %arg5[%582, %c0_115] : memref<32x16xf32, #tpu.memory_space<vmem>>, vector<1x16xf32>
    %584 = vector.shape_cast %583 : vector<1x16xf32> to vector<16xf32>
    %585 = vector.shape_cast %584 : vector<16xf32> to vector<1x16xf32>
    %586 = vector.broadcast %585 : vector<1x16xf32> to vector<32x16xf32>
    %587 = arith.mulf %581, %586 : vector<32x16xf32>
    %588 = arith.addf %567, %587 : vector<32x16xf32>
    %c28_i32 = arith.constant 28 : i32
    %589 = arith.index_cast %c28_i32 : i32 to index
    %c0_116 = arith.constant 0 : index
    %590 = vector.load %arg3[%589, %c0_116] : memref<32x16xf32, #tpu.memory_space<vmem>>, vector<1x16xf32>
    %591 = vector.shape_cast %590 : vector<1x16xf32> to vector<16xf32>
    %592 = vector.shape_cast %591 : vector<16xf32> to vector<1x16xf32>
    %593 = vector.broadcast %592 : vector<1x16xf32> to vector<32x16xf32>
    %594 = arith.mulf %4, %593 : vector<32x16xf32>
    %595 = arith.index_cast %c28_i32 : i32 to index
    %c0_117 = arith.constant 0 : index
    %596 = vector.load %arg4[%595, %c0_117] : memref<32x16xf32, #tpu.memory_space<vmem>>, vector<1x16xf32>
    %597 = vector.shape_cast %596 : vector<1x16xf32> to vector<16xf32>
    %598 = vector.shape_cast %597 : vector<16xf32> to vector<1x16xf32>
    %599 = vector.broadcast %598 : vector<1x16xf32> to vector<32x16xf32>
    %600 = arith.addf %594, %599 : vector<32x16xf32>
    %cst_118 = arith.constant 0.000000e+00 : f32
    %601 = vector.broadcast %cst_118 : f32 to vector<32x16xf32>
    %602 = arith.maximumf %600, %601 : vector<32x16xf32>
    %603 = arith.index_cast %c28_i32 : i32 to index
    %c0_119 = arith.constant 0 : index
    %604 = vector.load %arg5[%603, %c0_119] : memref<32x16xf32, #tpu.memory_space<vmem>>, vector<1x16xf32>
    %605 = vector.shape_cast %604 : vector<1x16xf32> to vector<16xf32>
    %606 = vector.shape_cast %605 : vector<16xf32> to vector<1x16xf32>
    %607 = vector.broadcast %606 : vector<1x16xf32> to vector<32x16xf32>
    %608 = arith.mulf %602, %607 : vector<32x16xf32>
    %609 = arith.addf %588, %608 : vector<32x16xf32>
    %c29_i32 = arith.constant 29 : i32
    %610 = arith.index_cast %c29_i32 : i32 to index
    %c0_120 = arith.constant 0 : index
    %611 = vector.load %arg3[%610, %c0_120] : memref<32x16xf32, #tpu.memory_space<vmem>>, vector<1x16xf32>
    %612 = vector.shape_cast %611 : vector<1x16xf32> to vector<16xf32>
    %613 = vector.shape_cast %612 : vector<16xf32> to vector<1x16xf32>
    %614 = vector.broadcast %613 : vector<1x16xf32> to vector<32x16xf32>
    %615 = arith.mulf %4, %614 : vector<32x16xf32>
    %616 = arith.index_cast %c29_i32 : i32 to index
    %c0_121 = arith.constant 0 : index
    %617 = vector.load %arg4[%616, %c0_121] : memref<32x16xf32, #tpu.memory_space<vmem>>, vector<1x16xf32>
    %618 = vector.shape_cast %617 : vector<1x16xf32> to vector<16xf32>
    %619 = vector.shape_cast %618 : vector<16xf32> to vector<1x16xf32>
    %620 = vector.broadcast %619 : vector<1x16xf32> to vector<32x16xf32>
    %621 = arith.addf %615, %620 : vector<32x16xf32>
    %cst_122 = arith.constant 0.000000e+00 : f32
    %622 = vector.broadcast %cst_122 : f32 to vector<32x16xf32>
    %623 = arith.maximumf %621, %622 : vector<32x16xf32>
    %624 = arith.index_cast %c29_i32 : i32 to index
    %c0_123 = arith.constant 0 : index
    %625 = vector.load %arg5[%624, %c0_123] : memref<32x16xf32, #tpu.memory_space<vmem>>, vector<1x16xf32>
    %626 = vector.shape_cast %625 : vector<1x16xf32> to vector<16xf32>
    %627 = vector.shape_cast %626 : vector<16xf32> to vector<1x16xf32>
    %628 = vector.broadcast %627 : vector<1x16xf32> to vector<32x16xf32>
    %629 = arith.mulf %623, %628 : vector<32x16xf32>
    %630 = arith.addf %609, %629 : vector<32x16xf32>
    %c30_i32 = arith.constant 30 : i32
    %631 = arith.index_cast %c30_i32 : i32 to index
    %c0_124 = arith.constant 0 : index
    %632 = vector.load %arg3[%631, %c0_124] : memref<32x16xf32, #tpu.memory_space<vmem>>, vector<1x16xf32>
    %633 = vector.shape_cast %632 : vector<1x16xf32> to vector<16xf32>
    %634 = vector.shape_cast %633 : vector<16xf32> to vector<1x16xf32>
    %635 = vector.broadcast %634 : vector<1x16xf32> to vector<32x16xf32>
    %636 = arith.mulf %4, %635 : vector<32x16xf32>
    %637 = arith.index_cast %c30_i32 : i32 to index
    %c0_125 = arith.constant 0 : index
    %638 = vector.load %arg4[%637, %c0_125] : memref<32x16xf32, #tpu.memory_space<vmem>>, vector<1x16xf32>
    %639 = vector.shape_cast %638 : vector<1x16xf32> to vector<16xf32>
    %640 = vector.shape_cast %639 : vector<16xf32> to vector<1x16xf32>
    %641 = vector.broadcast %640 : vector<1x16xf32> to vector<32x16xf32>
    %642 = arith.addf %636, %641 : vector<32x16xf32>
    %cst_126 = arith.constant 0.000000e+00 : f32
    %643 = vector.broadcast %cst_126 : f32 to vector<32x16xf32>
    %644 = arith.maximumf %642, %643 : vector<32x16xf32>
    %645 = arith.index_cast %c30_i32 : i32 to index
    %c0_127 = arith.constant 0 : index
    %646 = vector.load %arg5[%645, %c0_127] : memref<32x16xf32, #tpu.memory_space<vmem>>, vector<1x16xf32>
    %647 = vector.shape_cast %646 : vector<1x16xf32> to vector<16xf32>
    %648 = vector.shape_cast %647 : vector<16xf32> to vector<1x16xf32>
    %649 = vector.broadcast %648 : vector<1x16xf32> to vector<32x16xf32>
    %650 = arith.mulf %644, %649 : vector<32x16xf32>
    %651 = arith.addf %630, %650 : vector<32x16xf32>
    %c31_i32 = arith.constant 31 : i32
    %652 = arith.index_cast %c31_i32 : i32 to index
    %c0_128 = arith.constant 0 : index
    %653 = vector.load %arg3[%652, %c0_128] : memref<32x16xf32, #tpu.memory_space<vmem>>, vector<1x16xf32>
    %654 = vector.shape_cast %653 : vector<1x16xf32> to vector<16xf32>
    %655 = vector.shape_cast %654 : vector<16xf32> to vector<1x16xf32>
    %656 = vector.broadcast %655 : vector<1x16xf32> to vector<32x16xf32>
    %657 = arith.mulf %4, %656 : vector<32x16xf32>
    %658 = arith.index_cast %c31_i32 : i32 to index
    %c0_129 = arith.constant 0 : index
    %659 = vector.load %arg4[%658, %c0_129] : memref<32x16xf32, #tpu.memory_space<vmem>>, vector<1x16xf32>
    %660 = vector.shape_cast %659 : vector<1x16xf32> to vector<16xf32>
    %661 = vector.shape_cast %660 : vector<16xf32> to vector<1x16xf32>
    %662 = vector.broadcast %661 : vector<1x16xf32> to vector<32x16xf32>
    %663 = arith.addf %657, %662 : vector<32x16xf32>
    %cst_130 = arith.constant 0.000000e+00 : f32
    %664 = vector.broadcast %cst_130 : f32 to vector<32x16xf32>
    %665 = arith.maximumf %663, %664 : vector<32x16xf32>
    %666 = arith.index_cast %c31_i32 : i32 to index
    %c0_131 = arith.constant 0 : index
    %667 = vector.load %arg5[%666, %c0_131] : memref<32x16xf32, #tpu.memory_space<vmem>>, vector<1x16xf32>
    %668 = vector.shape_cast %667 : vector<1x16xf32> to vector<16xf32>
    %669 = vector.shape_cast %668 : vector<16xf32> to vector<1x16xf32>
    %670 = vector.broadcast %669 : vector<1x16xf32> to vector<32x16xf32>
    %671 = arith.mulf %665, %670 : vector<32x16xf32>
    %672 = arith.addf %651, %671 : vector<32x16xf32>
    %c31_i32_132 = arith.constant 31 : i32
    %cst_133 = arith.constant dense<0.000000e+00> : vector<32xf32>
    %673 = vector.multi_reduction <add>, %672, %cst_133 [1] : vector<32x16xf32> to vector<32xf32>
    %674 = vector.shape_cast %673 : vector<32xf32> to vector<32x1xf32>
    %675 = vector.broadcast %0 : f32 to vector<32x1xf32>
    %676 = arith.addf %674, %675 : vector<32x1xf32>
    %677 = arith.negf %676 : vector<32x1xf32>
    %678 = math.exp %677 : vector<32x1xf32>
    %cst_134 = arith.constant 1.000000e+00 : f32
    %679 = vector.broadcast %cst_134 : f32 to vector<32x1xf32>
    %680 = arith.addf %679, %678 : vector<32x1xf32>
    %681 = arith.divf %679, %680 : vector<32x1xf32>
    %682 = arith.index_cast %2 : i32 to index
    %c0_135 = arith.constant 0 : index
    %683 = vector.load %arg6[%682, %c0_135] : memref<32x1xf32, #tpu.memory_space<vmem>>, vector<32x1xf32>
    tpu.vector_store %arg6[%682, %c0_135], %681 {strides = array<i32>} : memref<32x1xf32, #tpu.memory_space<vmem>>, vector<32x1xf32>,
    %c1_i32_136 = arith.constant 1 : i32
    return
  }
  func.func @transform_0(%arg0: i32) -> (i32, i32) {
    %c0_i32 = arith.constant 0 : i32
    %c0_i32_0 = arith.constant 0 : i32
    %c0_i32_1 = arith.constant 0 : i32
    return %c0_i32, %c0_i32_0 : i32, i32
  }
  func.func @transform_1(%arg0: i32) -> (i32, i32) {
    %c0_i32 = arith.constant 0 : i32
    %c0_i32_0 = arith.constant 0 : i32
    return %arg0, %c0_i32 : i32, i32
  }
  func.func @transform_2(%arg0: i32) -> (i32, i32) {
    %c0_i32 = arith.constant 0 : i32
    %c0_i32_0 = arith.constant 0 : i32
    %c0_i32_1 = arith.constant 0 : i32
    return %c0_i32, %c0_i32_0 : i32, i32
  }
  func.func @transform_3(%arg0: i32) -> (i32, i32) {
    %c0_i32 = arith.constant 0 : i32
    %c0_i32_0 = arith.constant 0 : i32
    %c0_i32_1 = arith.constant 0 : i32
    return %c0_i32, %c0_i32_0 : i32, i32
  }
  func.func @transform_4(%arg0: i32) -> (i32, i32) {
    %c0_i32 = arith.constant 0 : i32
    %c0_i32_0 = arith.constant 0 : i32
    %c0_i32_1 = arith.constant 0 : i32
    return %c0_i32, %c0_i32_0 : i32, i32
  }
  func.func @transform_5(%arg0: i32) -> (i32, i32) {
    %c0_i32 = arith.constant 0 : i32
    %c0_i32_0 = arith.constant 0 : i32
    return %arg0, %c0_i32 : i32, i32
  }
}

</mosaic_0001>

<bundles_post_ra>
// kernel: nn_forward.1
= control target key start
LH: loop header
LB: loop body
LE: loop exit
PB: predicated region body
PF: predicated region fallthrough
CT: control target
= control target key end

     0   :  { %vm1142_vm0 = vcmask 130048   ;;  %vm1184_vm1 = vcmask 7168   ;;  %s2665_s0 = inlined_call_operand.<no memory space> [shape: f32[1,1], index: 0, kind: input, shape index: {}]   ;;  %s2666_s1 = inlined_call_operand.vmem [shape: f32[2,16], index: 1, kind: input, shape index: {}]   ;;  %s2667_s2 = inlined_call_operand.vmem [shape: f32[32,16], index: 2, kind: input, shape index: {}]   ;;  %s2668_s3 = inlined_call_operand.vmem [shape: f32[32,16], index: 3, kind: input, shape index: {}]   ;;  %s2669_s4 = inlined_call_operand.vmem [shape: f32[32,16], index: 4, kind: input, shape index: {}]   ;;  %s2670_s5 = inlined_call_operand.vmem [shape: f32[2,1], index: 5, kind: output, shape index: {}]  }
   0x1   :  { %v1447_v0 = vld [vmem:[%s2666_s1] sm:$0xff]  ;;  %v1548_v29 = vld [vmem:[%s2666_s1 + $0x10] sm:$0xff]  ;;  %v1591_v50 = vld [vmem:[%s2667_s2 + $0x8] ss:$0 sm:$0xff] }
   0x2   :  { %v1452_v1 = vld [vmem:[%s2667_s2] ss:$0 sm:$0xff]  ;;  %v1464_v4 = vld [vmem:[%s2667_s2 + $0x1] ss:$0 sm:$0xff]  ;;  %v1476_v7 = vld [vmem:[%s2667_s2 + $0x2] ss:$0 sm:$0xff]  ;;  %v307_v54 = vmul.f32 %v1591_v50, %v1447_v0 }
   0x3   :  { %2799 = vst [vmem:[#allocation4_spill] sm:$0xff] %v1452_v1  ;;  %v1457_v2 = vld [vmem:[%s2668_s3] ss:$0 sm:$0xff]  ;;  %v31_v3 = vmul.f32 %v1452_v1, %v1447_v0  ;;  %2801 = vst [vmem:[#allocation6_spill] sm:$0xff] %v1464_v4  ;;  %v1469_v5 = vld [vmem:[%s2668_s3 + $0x1] ss:$0 sm:$0xff]  ;;  %v62_v6 = vmul.f32 %v1464_v4, %v1447_v0  ;;  %v97_v11 = vmul.f32 %v1476_v7, %v1447_v0 }
   0x4   :  { %2800 = vst [vmem:[#allocation5_spill] sm:$0xff] %v1457_v2  ;;  %2802 = vst [vmem:[#allocation7_spill] sm:$0xff] %v1469_v5  ;;  %v1481_v8 = vld [vmem:[%s2668_s3 + $0x2] ss:$0 sm:$0xff]  ;;  %v1487_v10 = vld [vmem:[%s2669_s4] ss:$0 sm:$0xff]  ;;  %v33_v45 = vmul.f32 %v1452_v1, %v1548_v29  ;;  %v64_v57 = vmul.f32 %v1464_v4, %v1548_v29 }
   0x5   :  { %2803 = vst [vmem:[#allocation8_spill] sm:$0xff] %v1476_v7  ;;  %2804 = vst [vmem:[#allocation9_spill] sm:$0xff] %v1481_v8  ;;  %v40_v9 = vadd.f32 %v1457_v2, %v31_v3  ;;  %v1494_v12 = vld [vmem:[%s2667_s2 + $0x3] ss:$0 sm:$0xff]  ;;  %v71_v14 = vadd.f32 %v1469_v5, %v62_v6  ;;  %v1505_v15 = vld [vmem:[%s2669_s4 + $0x1] ss:$0 sm:$0xff]  ;;  %v106_v20 = vadd.f32 %v1481_v8, %v97_v11 }
   0x6   :  { %2805 = vst [vmem:[#allocation10_spill] sm:$0xff] %v1487_v10  ;;  %2806 = vst [vmem:[#allocation11_spill] sm:$0xff] %v1494_v12  ;;  %v1499_v13 = vld [vmem:[%s2668_s3 + $0x3] ss:$0 sm:$0xff]  ;;  %v132_v16 = vmul.f32 %v1494_v12, %v1447_v0  ;;  %v1512_v17 = vld [vmem:[%s2667_s2 + $0x4] ss:$0 sm:$0xff]  ;;  %v42_v11 = vadd.f32 %v1457_v2, %v33_v45 }
   0x7   :  { %2807 = vst [vmem:[#allocation12_spill] sm:$0xff] %v1499_v13  ;;  %2808 = vst [vmem:[#allocation13_spill] sm:$0xff] %v1505_v15  ;;  %v1517_v18 = vld [vmem:[%s2668_s3 + $0x4] ss:$0 sm:$0xff]  ;;  %v44_v19 = vmax.f32 %v40_v9, 0.0  ;;  %v167_v22 = vmul.f32 %v1512_v17, %v1447_v0  ;;  %v75_v24 = vmax.f32 %v71_v14, 0.0 }
   0x8   :  { %2809 = vst [vmem:[#allocation14_spill] sm:$0xff] %v1512_v17  ;;  %2810 = vst [vmem:[#allocation15_spill] sm:$0xff] %v1517_v18  ;;  %v1523_v21 = vld [vmem:[%s2669_s4 + $0x2] ss:$0 sm:$0xff]  ;;  %v1530_v23 = vld [vmem:[%s2667_s2 + $0x5] ss:$0 sm:$0xff]  ;;  %v141_v25 = vadd.f32 %v1499_v13, %v132_v16 }
   0x9   :  { %2811 = vst [vmem:[#allocation16_spill] sm:$0xff] %v1523_v21  ;;  %2812 = vst [vmem:[#allocation17_spill] sm:$0xff] %v1530_v23  ;;  %v1536_v26 = vld [vmem:[%s2669_s4 + $0x3] ss:$0 sm:$0xff]  ;;  %v202_v27 = vmul.f32 %v1530_v23, %v1447_v0  ;;  %v1543_v28 = vld [vmem:[%s2668_s3 + $0x5] ss:$0 sm:$0xff]  ;;  %v53_v30 = vmul.f32 %v1487_v10, %v44_v19  ;;  %v176_v32 = vadd.f32 %v1517_v18, %v167_v22 }
   0xa   :  { %2813 = vst [vmem:[#allocation18_spill] sm:$0xff] %v1536_v26  ;;  %2814 = vst [vmem:[#allocation19_spill] sm:$0xff] %v1543_v28  ;;  %v110_v31 = vmax.f32 %v106_v20, 0.0  ;;  %v1555_v33 = vld [vmem:[%s2667_s2 + $0x6] ss:$0 sm:$0xff]  ;;  %v84_v35 = vmul.f32 %v1505_v15, %v75_v24  ;;  %v145_v36 = vmax.f32 %v141_v25, 0.0 }
   0xb   :  { %2815 = vst [vmem:[#allocation20_spill] sm:$0xff] %v1555_v33  ;;  %v1560_v34 = vld [vmem:[%s2668_s3 + $0x6] ss:$0 sm:$0xff]  ;;  %v211_v37 = vadd.f32 %v1543_v28, %v202_v27  ;;  %v237_v38 = vmul.f32 %v1555_v33, %v1447_v0  ;;  %v1569_v39 = vld [vmem:[%s2667_s2 + $0x7] ss:$0 sm:$0xff]  ;;  %v180_v41 = vmax.f32 %v176_v32, 0.0  ;;  %v73_v32 = vadd.f32 %v1469_v5, %v64_v57 }
   0xc   :  { %2816 = vst [vmem:[#allocation21_spill] sm:$0xff] %v1569_v39  ;;  %v119_v40 = vmul.f32 %v1523_v21, %v110_v31  ;;  %v1575_v42 = vld [vmem:[%s2669_s4 + $0x4] ss:$0 sm:$0xff]  ;;  %v272_v43 = vmul.f32 %v1569_v39, %v1447_v0  ;;  %v1582_v44 = vld [vmem:[%s2668_s3 + $0x7] ss:$0 sm:$0xff]  ;;  %v88_v46 = vadd.f32 %v84_v35, %v53_v30  ;;  %v154_v47 = vmul.f32 %v1536_v26, %v145_v36 }
   0xd   :  { %v215_v48 = vmax.f32 %v211_v37, 0.0  ;;  %v246_v49 = vadd.f32 %v1560_v34, %v237_v38  ;;  %v1596_v51 = vld [vmem:[%s2668_s3 + $0x8] ss:$0 sm:$0xff]  ;;  %v1601_v52 = vld [vmem:[%s2669_s4 + $0x5] ss:$0 sm:$0xff]  ;;  %v189_v59 = vmul.f32 %v1575_v42, %v180_v41 }
   0xe   :  { %v281_v53 = vadd.f32 %v1582_v44, %v272_v43  ;;  %v1609_v55 = vld [vmem:[%s2667_s2 + $0x9] ss:$0 sm:$0xff]  ;;  %v123_v58 = vadd.f32 %v119_v40, %v88_v46  ;;  %v1624_v62 = vld [vmem:[%s2667_s2 + $0xa] ss:$0 sm:$0xff]  ;;  %v1629_v63 = vld [vmem:[%s2669_s4 + $0x6] ss:$0 sm:$0xff]  ;;  %v316_v3 = vadd.f32 %v1596_v51, %v307_v54 }
   0xf   :  { %v1614_v56 = vld [vmem:[%s2668_s3 + $0x9] ss:$0 sm:$0xff]  ;;  %v250_v60 = vmax.f32 %v246_v49, 0.0  ;;  %v342_v61 = vmul.f32 %v1609_v55, %v1447_v0  ;;  %v377_v6 = vmul.f32 %v1624_v62, %v1447_v0  ;;  %v1637_v9 = vld [vmem:[%s2668_s3 + $0xa] ss:$0 sm:$0xff]  ;;  %v224_v16 = vmul.f32 %v1601_v52, %v215_v48 }
  0x10   :  { %v158_v14 = vadd.f32 %v154_v47, %v123_v58  ;;  %v285_v19 = vmax.f32 %v281_v53, 0.0  ;;  %v1644_v20 = vld [vmem:[%s2669_s4 + $0x7] ss:$0 sm:$0xff]  ;;  %v1650_v24 = vld [vmem:[%s2667_s2 + $0xb] ss:$0 sm:$0xff]  ;;  %v320_v25 = vmax.f32 %v316_v3, 0.0 }
  0x11   :  { %2817 = vst [vmem:[#allocation22_spill] sm:$0xff] %v1644_v20  ;;  %v351_v22 = vadd.f32 %v1614_v56, %v342_v61  ;;  %v412_v27 = vmul.f32 %v1650_v24, %v1447_v0  ;;  %v1657_v30 = vld [vmem:[%s2668_s3 + $0xb] ss:$0 sm:$0xff]  ;;  %v1662_v31 = vld [vmem:[%s2667_s2 + $0xc] ss:$0 sm:$0xff]  ;;  %v259_v36 = vmul.f32 %v1629_v63, %v250_v60  ;;  %v386_v38 = vadd.f32 %v1637_v9, %v377_v6 }
  0x12   :  { %v193_v35 = vadd.f32 %v189_v59, %v158_v14  ;;  %v1669_v37 = vld [vmem:[%s2669_s4 + $0x8] ss:$0 sm:$0xff]  ;;  %v447_v40 = vmul.f32 %v1662_v31, %v1447_v0  ;;  %v1677_v41 = vld [vmem:[%s2668_s3 + $0xc] ss:$0 sm:$0xff]  ;;  %v1682_v43 = vld [vmem:[%s2667_s2 + $0xd] ss:$0 sm:$0xff]  ;;  %v294_v49 = vmul.f32 %v1644_v20, %v285_v19 }
  0x13   :  { %2818 = vst [vmem:[#allocation23_spill] sm:$0xff] %v1669_v37  ;;  %2819 = vst [vmem:[#allocation24_spill] sm:$0xff] %v1677_v41  ;;  %v482_v45 = vmul.f32 %v1682_v43, %v1447_v0  ;;  %v1689_v46 = vld [vmem:[%s2668_s3 + $0xd] ss:$0 sm:$0xff]  ;;  %v46_v47 = vmax.f32 %v42_v11, 0.0  ;;  %v355_v53 = vmax.f32 %v351_v22, 0.0  ;;  %v421_v54 = vadd.f32 %v1657_v30, %v412_v27 }
  0x14   :  { %2820 = vst [vmem:[#allocation25_spill] sm:$0xff] %v1689_v46  ;;  %v228_v48 = vadd.f32 %v224_v16, %v193_v35  ;;  %v1696_v57 = vld [vmem:[%s2667_s2 + $0xe] ss:$0 sm:$0xff]  ;;  %v329_v59 = vmul.f32 %v1669_v37, %v320_v25  ;;  %v1707_v60 = vld [vmem:[%s2669_s4 + $0x9] ss:$0 sm:$0xff]  ;;  %v456_v61 = vadd.f32 %v1677_v41, %v447_v40  ;;  %v390_v19 = vmax.f32 %v386_v38, 0.0 }
  0x15   :  { %2821 = vst [vmem:[#allocation26_spill] sm:$0xff] %v1696_v57  ;;  %v1701_v58 = vld [vmem:[%s2668_s3 + $0xe] ss:$0 sm:$0xff]  ;;  %2823 = vst [vmem:[#allocation28_spill] sm:$0xff] %v1707_v60  ;;  %v491_v3 = vadd.f32 %v1689_v46, %v482_v45  ;;  %v517_v6 = vmul.f32 %v1696_v57, %v1447_v0  ;;  %v1716_v11 = vld [vmem:[%s2667_s2 + $0xf] ss:$0 sm:$0xff]  ;;  %v364_v4 = vmul.f32 %v1707_v60, %v355_v53 }
  0x16   :  { %2822 = vst [vmem:[#allocation27_spill] sm:$0xff] %v1701_v58  ;;  %2824 = vst [vmem:[#allocation29_spill] sm:$0xff] %v1716_v11  ;;  %v1721_v14 = vld [vmem:[%s2668_s3 + $0xf] ss:$0 sm:$0xff]  ;;  %v263_v16 = vadd.f32 %v259_v36, %v228_v48  ;;  %v552_v22 = vmul.f32 %v1716_v11, %v1447_v0  ;;  %v1728_v25 = vld [vmem:[%s2667_s2 + $0x10] ss:$0 sm:$0xff]  ;;  %v99_v48 = vmul.f32 %v1476_v7, %v1548_v29 }
  0x17   :  { %2825 = vst [vmem:[#allocation30_spill] sm:$0xff] %v1721_v14  ;;  %2826 = vst [vmem:[#allocation31_spill] sm:$0xff] %v1728_v25  ;;  %v77_v27 = vmax.f32 %v73_v32, 0.0  ;;  %v1733_v35 = vld [vmem:[%s2669_s4 + $0xa] ss:$0 sm:$0xff]  ;;  %v526_v36 = vadd.f32 %v1701_v58, %v517_v6  ;;  %v587_v38 = vmul.f32 %v1728_v25, %v1447_v0  ;;  %v55_v32 = vmul.f32 %v1487_v10, %v46_v47 }
  0x18   :  { %2827 = vst [vmem:[#allocation32_spill] sm:$0xff] %v1733_v35  ;;  %v1738_v40 = vld [vmem:[%s2669_s4 + $0xb] ss:$0 sm:$0xff]  ;;  %v1746_v45 = vld [vmem:[%s2668_s3 + $0x10] ss:$0 sm:$0xff]  ;;  %v298_v5 = vadd.f32 %v294_v49, %v263_v16  ;;  %v425_v2 = vmax.f32 %v421_v54, 0.0  ;;  %v561_v1 = vadd.f32 %v1721_v14, %v552_v22  ;;  %v399_v22 = vmul.f32 %v1733_v35, %v390_v19 }
  0x19   :  { %2828 = vst [vmem:[#allocation33_spill] sm:$0xff] %v1738_v40  ;;  %2829 = vst [vmem:[#allocation34_spill] sm:$0xff] %v1746_v45  ;;  %v1756_v6 = vld [vmem:[%s2667_s2 + $0x11] ss:$0 sm:$0xff]  ;;  %v460_v47 = vmax.f32 %v456_v61, 0.0  ;;  %v495_v10 = vmax.f32 %v491_v3, 0.0  ;;  %v596_v7 = vadd.f32 %v1746_v45, %v587_v38  ;;  %v108_v35 = vadd.f32 %v1481_v8, %v99_v48 }
  0x1a   :  { %2830 = vst [vmem:[#allocation35_spill] sm:$0xff] %v1756_v6  ;;  %v1761_v25 = vld [vmem:[%s2668_s3 + $0x11] ss:$0 sm:$0xff]  ;;  %v622_v49 = vmul.f32 %v1756_v6, %v1447_v0  ;;  %v1769_v53 = vld [vmem:[%s2667_s2 + $0x12] ss:$0 sm:$0xff]  ;;  %v333_v16 = vadd.f32 %v329_v59, %v298_v5  ;;  %v86_v5 = vmul.f32 %v1505_v15, %v77_v27  ;;  %v530_v59 = vmax.f32 %v526_v36, 0.0 }
  0x1b   :  { %2831 = vst [vmem:[#allocation36_spill] sm:$0xff] %v1761_v25  ;;  %2832 = vst [vmem:[#allocation37_spill] sm:$0xff] %v1769_v53  ;;  %v1774_v54 = vld [vmem:[%s2668_s3 + $0x12] ss:$0 sm:$0xff]  ;;  %v1780_v61 = vld [vmem:[%s2669_s4 + $0xc] ss:$0 sm:$0xff]  ;;  %v657_v38 = vmul.f32 %v1769_v53, %v1447_v0  ;;  %v434_v27 = vmul.f32 %v1738_v40, %v425_v2 }
  0x1c   :  { %2833 = vst [vmem:[#allocation38_spill] sm:$0xff] %v1774_v54  ;;  %2834 = vst [vmem:[#allocation39_spill] sm:$0xff] %v1780_v61  ;;  %v1785_v3 = vld [vmem:[%s2669_s4 + $0xd] ss:$0 sm:$0xff]  ;;  %v1792_v6 = vld [vmem:[%s2667_s2 + $0x13] ss:$0 sm:$0xff]  ;;  %v631_v53 = vadd.f32 %v1761_v25, %v622_v49  ;;  %v368_v58 = vadd.f32 %v364_v4, %v333_v16  ;;  %v469_v2 = vmul.f32 %v1780_v61, %v460_v47 }
  0x1d   :  { %2835 = vst [vmem:[#allocation40_spill] sm:$0xff] %v1785_v3  ;;  %2836 = vst [vmem:[#allocation41_spill] sm:$0xff] %v1792_v6  ;;  %v1798_v19 = vld [vmem:[%s2669_s4 + $0xe] ss:$0 sm:$0xff]  ;;  %v1803_v45 = vld [vmem:[%s2669_s4 + $0xf] ss:$0 sm:$0xff]  ;;  %v692_v14 = vmul.f32 %v1792_v6, %v1447_v0  ;;  %v666_v11 = vadd.f32 %v1774_v54, %v657_v38  ;;  %v1857_v6 = vadd.f32 %v86_v5, %v55_v32 }
  0x1e   :  { %2837 = vst [vmem:[#allocation42_spill] sm:$0xff] %v1798_v19  ;;  %2838 = vst [vmem:[#allocation43_spill] sm:$0xff] %v1803_v45  ;;  %v565_v36 = vmax.f32 %v561_v1, 0.0  ;;  %v1813_v15 = vld [vmem:[%s2669_s4 + $0x10] ss:$0 sm:$0xff]  ;;  %v504_v1 = vmul.f32 %v1785_v3, %v495_v10  ;;  %v600_v4 = vmax.f32 %v596_v7, 0.0  ;;  %v403_v10 = vadd.f32 %v399_v22, %v368_v58 }
  0x1f   :  { %2839 = vst [vmem:[#allocation44_spill] sm:$0xff] %v1813_v15  ;;  %v1819_v49 = vld [vmem:[%s2668_s3 + $0x13] ss:$0 sm:$0xff]  ;;  %v1824_v48 = vld [vmem:[%s2667_s2 + $0x14] ss:$0 sm:$0xff]  ;;  %v635_v7 = vmax.f32 %v631_v53, 0.0  ;;  %v539_v25 = vmul.f32 %v1798_v19, %v530_v59 }
  0x20   :  { %2840 = vst [vmem:[#allocation45_spill] sm:$0xff] %v1819_v49  ;;  %2841 = vst [vmem:[#allocation46_spill] sm:$0xff] %v1824_v48  ;;  %v1831_v16 = vld [vmem:[%s2669_s4 + $0x11] ss:$0 sm:$0xff]  ;;  %v727_v38 = vmul.f32 %v1824_v48, %v1447_v0  ;;  %v1838_v8 = vld [vmem:[%s2668_s3 + $0x14] ss:$0 sm:$0xff]  ;;  %v701_v53 = vadd.f32 %v1819_v49, %v692_v14  ;;  %v438_v32 = vadd.f32 %v434_v27, %v403_v10 }
  0x21   :  { %2842 = vst [vmem:[#allocation47_spill] sm:$0xff] %v1831_v16  ;;  %2843 = vst [vmem:[#allocation48_spill] sm:$0xff] %v1838_v8  ;;  %v1843_v47 = vld [vmem:[%s2667_s2 + $0x15] ss:$0 sm:$0xff]  ;;  %v1855_v48 = vld [vmem:[%s2667_s2 + $0x16] ss:$0 sm:$0xff]  ;;  %v574_v5 = vmul.f32 %v1803_v45, %v565_v36  ;;  %v134_v49 = vmul.f32 %v1494_v12, %v1548_v29 }
  0x22   :  { %2844 = vst [vmem:[#allocation49_spill] sm:$0xff] %v1843_v47  ;;  %v762_v3 = vmul.f32 %v1843_v47, %v1447_v0  ;;  %v1850_v54 = vld [vmem:[%s2668_s3 + $0x15] ss:$0 sm:$0xff]  ;;  %2846 = vst [vmem:[#allocation51_spill] sm:$0xff] %v1855_v48  ;;  %v670_v61 = vmax.f32 %v666_v11, 0.0  ;;  %v797_v22 = vmul.f32 %v1855_v48, %v1447_v0  ;;  %v112_v59 = vmax.f32 %v108_v35, 0.0 }
  0x23   :  { %2845 = vst [vmem:[#allocation50_spill] sm:$0xff] %v1850_v54  ;;  %v1863_v58 = vld [vmem:[%s2669_s4 + $0x12] ss:$0 sm:$0xff]  ;;  %v1871_v47 = vld [vmem:[%s2668_s3 + $0x16] ss:$0 sm:$0xff]  ;;  %v609_v48 = vmul.f32 %v1813_v15, %v600_v4  ;;  %v736_v27 = vadd.f32 %v1838_v8, %v727_v38  ;;  %v473_v12 = vadd.f32 %v469_v2, %v438_v32  ;;  %v644_v4 = vmul.f32 %v1831_v16, %v635_v7 }
  0x24   :  { %2847 = vst [vmem:[#allocation52_spill] sm:$0xff] %v1863_v58  ;;  %2848 = vst [vmem:[#allocation53_spill] sm:$0xff] %v1871_v47  ;;  %v1877_v11 = vld [vmem:[%s2667_s2 + $0x17] ss:$0 sm:$0xff]  ;;  %v771_v36 = vadd.f32 %v1850_v54, %v762_v3  ;;  %v1894_v45 = vld [vmem:[%s2667_s2 + $0x18] ss:$0 sm:$0xff]  ;;  %v806_v38 = vadd.f32 %v1871_v47, %v797_v22 }
  0x25   :  { %2849 = vst [vmem:[#allocation54_spill] sm:$0xff] %v1877_v11  ;;  %v1882_v14 = vld [vmem:[%s2668_s3 + $0x17] ss:$0 sm:$0xff]  ;;  %v832_v10 = vmul.f32 %v1877_v11, %v1447_v0  ;;  %2851 = vst [vmem:[#allocation56_spill] sm:$0xff] %v1894_v45  ;;  %v1899_v35 = vld [vmem:[%s2668_s3 + $0x18] ss:$0 sm:$0xff]  ;;  %v867_v3 = vmul.f32 %v1894_v45, %v1447_v0  ;;  %v1911_v11 = vmul.f32 %v1863_v58, %v670_v61 }
  0x26   :  { %2850 = vst [vmem:[#allocation55_spill] sm:$0xff] %v1882_v14  ;;  %2852 = vst [vmem:[#allocation57_spill] sm:$0xff] %v1899_v35  ;;  %v1908_v54 = vld [vmem:[%s2667_s2 + $0x19] ss:$0 sm:$0xff]  ;;  %v705_v8 = vmax.f32 %v701_v53, 0.0  ;;  %v508_v22 = vadd.f32 %v504_v1, %v473_v12  ;;  %v121_v58 = vmul.f32 %v1523_v21, %v112_v59  ;;  %v143_v12 = vadd.f32 %v1499_v13, %v134_v49 }
  0x27   :  { %2853 = vst [vmem:[#allocation58_spill] sm:$0xff] %v1908_v54  ;;  %v841_v15 = vadd.f32 %v1882_v14, %v832_v10  ;;  %v902_v2 = vmul.f32 %v1908_v54, %v1447_v0  ;;  %v1919_v7 = vld [vmem:[%s2668_s3 + $0x19] ss:$0 sm:$0xff]  ;;  %v1924_v32 = vld [vmem:[%s2669_s4 + $0x13] ss:$0 sm:$0xff]  ;;  %v876_v61 = vadd.f32 %v1899_v35, %v867_v3  ;;  %v740_v1 = vmax.f32 %v736_v27, 0.0 }
  0x28   :  { %2854 = vst [vmem:[#allocation59_spill] sm:$0xff] %v1919_v7  ;;  %2855 = vst [vmem:[#allocation60_spill] sm:$0xff] %v1924_v32  ;;  %v1930_v53 = vld [vmem:[%s2667_s2 + $0x1a] ss:$0 sm:$0xff]  ;;  %v1942_v54 = vld [vmem:[%s2669_s4 + $0x14] ss:$0 sm:$0xff]  ;;  %v543_v27 = vadd.f32 %v539_v25, %v508_v22 }
  0x29   :  { %2856 = vst [vmem:[#allocation61_spill] sm:$0xff] %v1930_v53  ;;  %v1935_v10 = vld [vmem:[%s2668_s3 + $0x1a] ss:$0 sm:$0xff]  ;;  %v775_v3 = vmax.f32 %v771_v36, 0.0  ;;  %v1947_v35 = vld [vmem:[%s2669_s4 + $0x15] ss:$0 sm:$0xff]  ;;  %v911_v14 = vadd.f32 %v1919_v7, %v902_v2  ;;  %v937_v47 = vmul.f32 %v1930_v53, %v1447_v0 }
  0x2a   :  { %2857 = vst [vmem:[#allocation62_spill] sm:$0xff] %v1935_v10  ;;  %v1955_v49 = vld [vmem:[%s2667_s2 + $0x1b] ss:$0 sm:$0xff]  ;;  %v810_v36 = vmax.f32 %v806_v38, 0.0  ;;  %v1965_v21 = vld [vmem:[%s2669_s4 + $0x16] ss:$0 sm:$0xff]  ;;  %v578_v45 = vadd.f32 %v574_v5, %v543_v27 }
  0x2b   :  { %2858 = vst [vmem:[#allocation63_spill] sm:$0xff] %v1955_v49  ;;  %v1960_v59 = vld [vmem:[%s2668_s3 + $0x1b] ss:$0 sm:$0xff]  ;;  %2860 = vst [vmem:[#allocation65_spill] sm:$0xff] %v1965_v21  ;;  %v972_v2 = vmul.f32 %v1955_v49, %v1447_v0  ;;  %v1972_v13 = vld [vmem:[%s2667_s2 + $0x1c] ss:$0 sm:$0xff]  ;;  %v946_v22 = vadd.f32 %v1935_v10, %v937_v47  ;;  %v784_v10 = vmul.f32 %v1947_v35, %v775_v3 }
  0x2c   :  { %2859 = vst [vmem:[#allocation64_spill] sm:$0xff] %v1960_v59  ;;  %2861 = vst [vmem:[#allocation66_spill] sm:$0xff] %v1972_v13  ;;  %v147_v53 = vmax.f32 %v143_v12, 0.0  ;;  %v845_v7 = vmax.f32 %v841_v15, 0.0  ;;  %v1977_v25 = vld [vmem:[%s2669_s4 + $0x17] ss:$0 sm:$0xff]  ;;  %v1007_v16 = vmul.f32 %v1972_v13, %v1447_v0  ;;  %v714_v12 = vmul.f32 %v1924_v32, %v705_v8 }
  0x2d   :  { %2862 = vst [vmem:[#allocation67_spill] sm:$0xff] %v1977_v25  ;;  %v880_v38 = vmax.f32 %v876_v61, 0.0  ;;  %v1985_v49 = vld [vmem:[%s2668_s3 + $0x1c] ss:$0 sm:$0xff]  ;;  %v1991_v15 = vld [vmem:[%s2669_s4 + $0x18] ss:$0 sm:$0xff]  ;;  %v981_v61 = vadd.f32 %v1960_v59, %v972_v2  ;;  %v613_v32 = vadd.f32 %v609_v48, %v578_v45  ;;  %v749_v59 = vmul.f32 %v1942_v54, %v740_v1 }
  0x2e   :  { %2863 = vst [vmem:[#allocation68_spill] sm:$0xff] %v1985_v49  ;;  %2864 = vst [vmem:[#allocation69_spill] sm:$0xff] %v1991_v15  ;;  %v915_v19 = vmax.f32 %v911_v14, 0.0  ;;  %v1997_v47 = vld [vmem:[%s2667_s2 + $0x1d] ss:$0 sm:$0xff]  ;;  %v950_v5 = vmax.f32 %v946_v22, 0.0  ;;  %v1016_v8 = vadd.f32 %v1985_v49, %v1007_v16  ;;  %v125_v14 = vadd.f32 %v121_v58, %v1857_v6 }
  0x2f   :  { %2865 = vst [vmem:[#allocation70_spill] sm:$0xff] %v1997_v47  ;;  %v2002_v13 = vld [vmem:[%s2669_s4 + $0x19] ss:$0 sm:$0xff]  ;;  %v2008_v27 = vld [vmem:[%s2667_s2 + $0x1e] ss:$0 sm:$0xff]  ;;  %v156_v2 = vmul.f32 %v1536_v26, %v147_v53  ;;  %v1042_v16 = vmul.f32 %v1997_v47, %v1447_v0  ;;  %v819_v49 = vmul.f32 %v1965_v21, %v810_v36  ;;  %v854_v40 = vmul.f32 %v1977_v25, %v845_v7 }
  0x30   :  { %2866 = vst [vmem:[#allocation71_spill] sm:$0xff] %v2002_v13  ;;  %2867 = vst [vmem:[#allocation72_spill] sm:$0xff] %v2008_v27  ;;  %v2017_v22 = vld [vmem:[%s2669_s4 + $0x1a] ss:$0 sm:$0xff]  ;;  %v2024_v6 = vmul.f32 %v1991_v15, %v880_v38  ;;  %v985_v45 = vmax.f32 %v981_v61, 0.0  ;;  %v648_v58 = vadd.f32 %v644_v4, %v613_v32  ;;  %v2032_v53 = vmul.f32 %v2002_v13, %v915_v19 }
  0x31   :  { %2868 = vst [vmem:[#allocation73_spill] sm:$0xff] %v2017_v22  ;;  %v2029_v48 = vld [vmem:[%s2668_s3 + $0x1d] ss:$0 sm:$0xff]  ;;  %v2037_v1 = vld [vmem:[%s2669_s4 + $0x1b] ss:$0 sm:$0xff]  ;;  %v1077_v7 = vmul.f32 %v2008_v27, %v1447_v0  ;;  %v169_v36 = vmul.f32 %v1512_v17, %v1548_v29  ;;  %v2049_v4 = vmul.f32 %v2017_v22, %v950_v5  ;;  %v1020_v19 = vmax.f32 %v1016_v8, 0.0 }
  0x32   :  { %2869 = vst [vmem:[#allocation74_spill] sm:$0xff] %v2029_v48  ;;  %2870 = vst [vmem:[#allocation75_spill] sm:$0xff] %v2037_v1  ;;  %v2044_v3 = vld [vmem:[%s2667_s2 + $0x1f] ss:$0 sm:$0xff]  ;;  %v2054_v32 = vld [vmem:[%s2668_s3 + $0x1e] ss:$0 sm:$0xff]  ;;  %v160_v38 = vadd.f32 %v156_v2, %v125_v14  ;;  %v204_v61 = vmul.f32 %v1530_v23, %v1548_v29  ;;  %v683_v26 = vadd.f32 %v1911_v11, %v648_v58 }
  0x33   :  { %2871 = vst [vmem:[#allocation76_spill] sm:$0xff] %v2044_v3  ;;  %2872 = vst [vmem:[#allocation77_spill] sm:$0xff] %v2054_v32  ;;  %v2062_v13 = vld [vmem:[%s2669_s4 + $0x1c] ss:$0 sm:$0xff]  ;;  %v1051_v5 = vadd.f32 %v2029_v48, %v1042_v16  ;;  %v178_v8 = vadd.f32 %v1517_v18, %v169_v36  ;;  %v239_v17 = vmul.f32 %v1555_v33, %v1548_v29 }
  0x34   :  { %v2069_v22 = vmul.f32 %v2037_v1, %v985_v45  ;;  %v1112_v14 = vmul.f32 %v2044_v3, %v1447_v0  ;;  %v213_v11 = vadd.f32 %v1543_v28, %v204_v61  ;;  %v274_v2 = vmul.f32 %v1569_v39, %v1548_v29 }
  0x35   :  { %v718_v58 = vadd.f32 %v714_v12, %v683_v26  ;;  %v2077_v23 = vadd.f32 %v2054_v32, %v1077_v7  ;;  %v182_v16 = vmax.f32 %v178_v8, 0.0  ;;  %v248_v36 = vadd.f32 %v1560_v34, %v239_v17 }
  0x36   :  { %v2081_v33 = vmul.f32 %v2062_v13, %v1020_v19  ;;  %v217_v45 = vmax.f32 %v213_v11, 0.0  ;;  %v283_v18 = vadd.f32 %v1582_v44, %v274_v2  ;;  %v309_v0 = vmul.f32 %v1591_v50, %v1548_v29 }
  0x37   :  { %v753_v61 = vadd.f32 %v749_v59, %v718_v58  ;;  %v191_v28 = vmul.f32 %v1575_v42, %v182_v16  ;;  %v252_v39 = vmax.f32 %v248_v36, 0.0  ;;  %v344_v26 = vmul.f32 %v1609_v55, %v1548_v29 }
  0x38   :  { %v226_v12 = vmul.f32 %v1601_v52, %v217_v45  ;;  %v287_v7 = vmax.f32 %v283_v18, 0.0  ;;  %v318_v17 = vadd.f32 %v1596_v51, %v309_v0  ;;  %v379_v19 = vmul.f32 %v1624_v62, %v1548_v29  ;;  %v2102_v0 = vld [vmem:[%s2668_s3 + $0x1f] ss:$0 sm:$0xff] }
  0x39   :  { %v788_v8 = vadd.f32 %v784_v10, %v753_v61  ;;  %v195_v11 = vadd.f32 %v191_v28, %v160_v38  ;;  %v261_v2 = vmul.f32 %v1629_v63, %v252_v39  ;;  %v353_v59 = vadd.f32 %v1614_v56, %v344_v26 }
  0x3a   :  { %v296_v58 = vmul.f32 %v1644_v20, %v287_v7  ;;  %v322_v16 = vmax.f32 %v318_v17, 0.0  ;;  %v388_v36 = vadd.f32 %v1637_v9, %v379_v19  ;;  %v414_v45 = vmul.f32 %v1650_v24, %v1548_v29 }
  0x3b   :  { %v823_v18 = vadd.f32 %v819_v49, %v788_v8  ;;  %v230_v10 = vadd.f32 %v226_v12, %v195_v11  ;;  %v357_v28 = vmax.f32 %v353_v59, 0.0  ;;  %v449_v39 = vmul.f32 %v1662_v31, %v1548_v29 }
  0x3c   :  { %v1055_v38 = vmax.f32 %v1051_v5, 0.0  ;;  %v331_v61 = vmul.f32 %v1669_v37, %v322_v16  ;;  %v423_v26 = vadd.f32 %v1657_v30, %v414_v45  ;;  %v484_v7 = vmul.f32 %v1682_v43, %v1548_v29  ;;  %v2119_v16 = vld [vmem:[%s2669_s4 + $0x1d] ss:$0 sm:$0xff] }
  0x3d   :  { %v858_v17 = vadd.f32 %v854_v40, %v823_v18  ;;  %v265_v49 = vadd.f32 %v261_v2, %v230_v10  ;;  %v392_v19 = vmax.f32 %v388_v36, 0.0  ;;  %v458_v8 = vadd.f32 %v1677_v41, %v449_v39  ;;  %v2873_v36 = vld [vmem:[#allocation29_spill] sm:$0xff]  ;;  %v2874_v10 = vld [vmem:[#allocation27_spill] sm:$0xff] }
  0x3e   :  { %v1121_v20 = vadd.f32 %v2102_v0, %v1112_v14  ;;  %v366_v12 = vmul.f32 %v1707_v60, %v357_v28  ;;  %v427_v11 = vmax.f32 %v423_v26, 0.0  ;;  %v519_v5 = vmul.f32 %v1696_v57, %v1548_v29  ;;  %v2875_v39 = vld [vmem:[#allocation31_spill] sm:$0xff]  ;;  %v2876_v60 = vld [vmem:[#allocation32_spill] sm:$0xff]  ;;  %v2877_v57 = vld [vmem:[#allocation30_spill] sm:$0xff] }
  0x3f   :  { %v893_v59 = vadd.f32 %v2024_v6, %v858_v17  ;;  %v300_v40 = vadd.f32 %v296_v58, %v265_v49  ;;  %v493_v2 = vadd.f32 %v1689_v46, %v484_v7  ;;  %v554_v45 = vmul.f32 %v2873_v36, %v1548_v29  ;;  %v2878_v49 = vld [vmem:[#allocation33_spill] sm:$0xff]  ;;  %v2879_v36 = vld [vmem:[#allocation34_spill] sm:$0xff] }
  0x40   :  { %v1090_v14 = vmax.f32 %v2077_v23, 0.0  ;;  %v462_v18 = vmax.f32 %v458_v8, 0.0  ;;  %v528_v28 = vadd.f32 %v2874_v10, %v519_v5  ;;  %v589_v26 = vmul.f32 %v2875_v39, %v1548_v29  ;;  %v2880_v23 = vld [vmem:[#allocation35_spill] sm:$0xff] }
  0x41   :  { %v928_v6 = vadd.f32 %v2032_v53, %v893_v59  ;;  %v335_v17 = vadd.f32 %v331_v61, %v300_v40  ;;  %v401_v37 = vmul.f32 %v2876_v60, %v392_v19  ;;  %v563_v58 = vadd.f32 %v2877_v57, %v554_v45  ;;  %v2140_v53 = vld [vmem:[%s2669_s4 + $0x1e] ss:$0 sm:$0xff]  ;;  %v2882_v59 = vld [vmem:[#allocation37_spill] sm:$0xff]  ;;  %v2887_v57 = vld [vmem:[#allocation38_spill] sm:$0xff] }
  0x42   :  { %v1064_v7 = vmul.f32 %v2119_v16, %v1055_v38  ;;  %v436_v46 = vmul.f32 %v2878_v49, %v427_v11  ;;  %v598_v41 = vadd.f32 %v2879_v36, %v589_v26  ;;  %v624_v8 = vmul.f32 %v2880_v23, %v1548_v29  ;;  %2881 = vst [vmem:[#allocation78_spill] sm:$0xff] %v2140_v53  ;;  %v2883_v11 = vld [vmem:[#allocation39_spill] sm:$0xff]  ;;  %v2884_v36 = vld [vmem:[#allocation36_spill] sm:$0xff]  ;;  %v2890_v60 = vld [vmem:[#allocation49_spill] sm:$0xff] }
  0x43   :  { %v963_v5 = vadd.f32 %v2049_v4, %v928_v6  ;;  %v370_v61 = vadd.f32 %v366_v12, %v335_v17  ;;  %v497_v19 = vmax.f32 %v493_v2, 0.0  ;;  %v659_v40 = vmul.f32 %v2882_v59, %v1548_v29  ;;  %v2150_v4 = vld [vmem:[%s2669_s4 + $0x1f] ss:$0 sm:$0xff]  ;;  %v2886_v2 = vld [vmem:[#allocation41_spill] sm:$0xff] }
  0x44   :  { %v1125_v38 = vmax.f32 %v1121_v20, 0.0  ;;  %v471_v45 = vmul.f32 %v2883_v11, %v462_v18  ;;  %v532_v26 = vmax.f32 %v528_v28, 0.0  ;;  %v633_v49 = vadd.f32 %v2884_v36, %v624_v8  ;;  %2885 = vst [vmem:[#allocation79_spill] sm:$0xff] %v2150_v4  ;;  %v2888_v28 = vld [vmem:[#allocation46_spill] sm:$0xff]  ;;  %v2889_v36 = vld [vmem:[#allocation40_spill] sm:$0xff]  ;;  %v2893_v10 = vld [vmem:[#allocation43_spill] sm:$0xff] }
  0x45   :  { %v998_v23 = vadd.f32 %v2069_v22, %v963_v5  ;;  %v405_v6 = vadd.f32 %v401_v37, %v370_v61  ;;  %v567_v12 = vmax.f32 %v563_v58, 0.0  ;;  %v694_v17 = vmul.f32 %v2886_v2, %v1548_v29  ;;  %v2891_v61 = vld [vmem:[#allocation42_spill] sm:$0xff] }
  0x46   :  { %v1099_v20 = vmul.f32 %v2140_v53, %v1090_v14  ;;  %v602_v59 = vmax.f32 %v598_v41, 0.0  ;;  %v668_v18 = vadd.f32 %v2887_v57, %v659_v40  ;;  %v729_v8 = vmul.f32 %v2888_v28, %v1548_v29  ;;  %v2892_v41 = vld [vmem:[#allocation51_spill] sm:$0xff]  ;;  %v2894_v53 = vld [vmem:[#allocation45_spill] sm:$0xff] }
  0x47   :  { %v1033_v22 = vadd.f32 %v2081_v33, %v998_v23  ;;  %v440_v5 = vadd.f32 %v436_v46, %v405_v6  ;;  %v506_v11 = vmul.f32 %v2889_v36, %v497_v19  ;;  %v764_v37 = vmul.f32 %v2890_v60, %v1548_v29  ;;  %v2895_v46 = vld [vmem:[#allocation44_spill] sm:$0xff]  ;;  %v2897_v60 = vld [vmem:[#allocation54_spill] sm:$0xff] }
  0x48   :  { %v1134_v58 = vmul.f32 %v2150_v4, %v1125_v38  ;;  %v541_v2 = vmul.f32 %v2891_v61, %v532_v26  ;;  %v637_v39 = vmax.f32 %v633_v49, 0.0  ;;  %v799_v14 = vmul.f32 %v2892_v41, %v1548_v29  ;;  %v2896_v6 = vld [vmem:[#allocation48_spill] sm:$0xff]  ;;  %v2898_v49 = vld [vmem:[#allocation50_spill] sm:$0xff] }
  0x49   :  { %v1068_v40 = vadd.f32 %v1064_v7, %v1033_v22  ;;  %v475_v57 = vadd.f32 %v471_v45, %v440_v5  ;;  %v576_v28 = vmul.f32 %v2893_v10, %v567_v12  ;;  %v703_v33 = vadd.f32 %v2894_v53, %v694_v17  ;;  %v2899_v41 = vld [vmem:[#allocation56_spill] sm:$0xff]  ;;  %v2900_v45 = vld [vmem:[#allocation47_spill] sm:$0xff]  ;;  %v2901_v12 = vld [vmem:[#allocation53_spill] sm:$0xff] }
  0x4a   :  { %v611_v23 = vmul.f32 %v2895_v46, %v602_v59  ;;  %v672_v19 = vmax.f32 %v668_v18, 0.0  ;;  %v738_v36 = vadd.f32 %v2896_v6, %v729_v8  ;;  %v834_v38 = vmul.f32 %v2897_v60, %v1548_v29  ;;  %v2902_v17 = vld [vmem:[#allocation55_spill] sm:$0xff]  ;;  %v2903_v59 = vld [vmem:[#allocation58_spill] sm:$0xff]  ;;  %v2904_v60 = vld [vmem:[#allocation57_spill] sm:$0xff] }
  0x4b   :  { %v1103_v4 = vadd.f32 %v1099_v20, %v1068_v40  ;;  %v510_v26 = vadd.f32 %v506_v11, %v475_v57  ;;  %v773_v61 = vadd.f32 %v2898_v49, %v764_v37  ;;  %v869_v7 = vmul.f32 %v2899_v41, %v1548_v29  ;;  %v2905_v57 = vld [vmem:[#allocation52_spill] sm:$0xff]  ;;  %v2906_v40 = vld [vmem:[#allocation59_spill] sm:$0xff]  ;;  %v2907_v41 = vld [vmem:[#allocation61_spill] sm:$0xff] }
  0x4c   :  { %v646_v22 = vmul.f32 %v2900_v45, %v637_v39  ;;  %v808_v5 = vadd.f32 %v2901_v12, %v799_v14  ;;  %v843_v10 = vadd.f32 %v2902_v17, %v834_v38  ;;  %v904_v18 = vmul.f32 %v2903_v59, %v1548_v29  ;;  %v2908_v17 = vld [vmem:[#allocation63_spill] sm:$0xff] }
  0x4d   :  { %v1138_v8 = vadd.f32 %v1134_v58, %v1103_v4  ;;  %v545_v46 = vadd.f32 %v541_v2, %v510_v26  ;;  %v707_v6 = vmax.f32 %v703_v33, 0.0  ;;  %v878_v20 = vadd.f32 %v2904_v60, %v869_v7  ;;  %v2909_v58 = vld [vmem:[#allocation62_spill] sm:$0xff] }
  0x4e   :  { %v681_v11 = vmul.f32 %v2905_v57, %v672_v19  ;;  %v742_v37 = vmax.f32 %v738_v36, 0.0  ;;  %v913_v49 = vadd.f32 %v2906_v40, %v904_v18  ;;  %v939_v39 = vmul.f32 %v2907_v41, %v1548_v29  ;;  %v2910_v19 = vld [vmem:[#allocation66_spill] sm:$0xff]  ;;  %v2911_v57 = vld [vmem:[#allocation64_spill] sm:$0xff] }
  0x4f   :  { %v1143_v14 = vsel %vm1142_vm0, %v1138_v8, 0.0  ;;  %v580_v45 = vadd.f32 %v576_v28, %v545_v46  ;;  %v777_v38 = vmax.f32 %v773_v61, 0.0  ;;  %v974_v12 = vmul.f32 %v2908_v17, %v1548_v29  ;;  %v2195_v28 = vld [vmem:[%s2666_s1 + $0x18] sm:$0xff]  ;;  %v2912_v61 = vld [vmem:[#allocation60_spill] sm:$0xff] }
  0x50   :  { %1144 = vadd.xlane.f32.xlu0 %v1143_v14  ;;  %v812_v4 = vmax.f32 %v808_v5, 0.0  ;;  %v847_v2 = vmax.f32 %v843_v10, 0.0  ;;  %v948_v33 = vadd.f32 %v2909_v58, %v939_v39  ;;  %v1009_v36 = vmul.f32 %v2910_v19, %v1548_v29 }
  0x51   :  { %v615_v26 = vadd.f32 %v611_v23, %v580_v45  ;;  %v882_v7 = vmax.f32 %v878_v20, 0.0  ;;  %v917_v18 = vmax.f32 %v913_v49, 0.0  ;;  %v983_v40 = vadd.f32 %v2911_v57, %v974_v12  ;;  %v2913_v45 = vld [vmem:[#allocation68_spill] sm:$0xff] }
  0x52   :  { %v716_v46 = vmul.f32 %v2912_v61, %v707_v6  ;;  %v751_v5 = vmul.f32 %v1942_v54, %v742_v37  ;;  %v1044_v10 = vmul.f32 %v1997_v47, %v1548_v29  ;;  %v786_v39 = vmul.f32 %v1947_v35, %v777_v38  ;;  %v2914_v6 = vld [vmem:[#allocation4_spill] sm:$0xff] }
  0x53   :  { %v650_v8 = vadd.f32 %v646_v22, %v615_v26  ;;  %v952_v23 = vmax.f32 %v948_v33, 0.0  ;;  %v2203_v49 = vadd.f32 %v2913_v45, %v1009_v36  ;;  %v821_v12 = vmul.f32 %v1965_v21, %v812_v4  ;;  %v2915_v22 = vld [vmem:[#allocation71_spill] sm:$0xff]  ;;  %v2916_v4 = vld [vmem:[#allocation5_spill] sm:$0xff] }
  0x54   :  { %v856_v20 = vmul.f32 %v1977_v25, %v847_v2  ;;  %v1079_v14 = vmul.f32 %v2008_v27, %v1548_v29  ;;  %v34_v37 = vmul.f32 %v2914_v6, %v2195_v28  ;;  %v891_v47 = vmul.f32 %v1991_v15, %v882_v7  ;;  %v2917_v2 = vld [vmem:[#allocation6_spill] sm:$0xff]  ;;  %v2918_v21 = vld [vmem:[#allocation73_spill] sm:$0xff]  ;;  %v2919_v7 = vld [vmem:[#allocation8_spill] sm:$0xff] }
  0x55   :  { %v685_v57 = vadd.f32 %v681_v11, %v650_v8  ;;  %v926_v26 = vmul.f32 %v2915_v22, %v917_v18  ;;  %v987_v38 = vmax.f32 %v983_v40, 0.0  ;;  %v1053_v33 = vadd.f32 %v2029_v48, %v1044_v10  ;;  %v2920_v10 = vld [vmem:[#allocation7_spill] sm:$0xff] }
  0x56   :  { %v1114_v36 = vmul.f32 %v2044_v3, %v1548_v29  ;;  %v43_v45 = vadd.f32 %v2916_v4, %v34_v37  ;;  %v65_v25 = vmul.f32 %v2917_v2, %v2195_v28  ;;  %v961_v19 = vmul.f32 %v2918_v21, %v952_v23  ;;  %v2921_v29 = vld [vmem:[#allocation11_spill] sm:$0xff]  ;;  %v2923_v23 = vld [vmem:[#allocation14_spill] sm:$0xff]  ;;  %v2925_v21 = vld [vmem:[#allocation12_spill] sm:$0xff] }
  0x57   :  { %v720_v27 = vadd.f32 %v716_v46, %v685_v57  ;;  %v1022_v11 = vmax.f32 %v2203_v49, 0.0  ;;  %v100_v8 = vmul.f32 %v2919_v7, %v2195_v28  ;;  %v2224_v40 = vadd.f32 %v2054_v32, %v1079_v14  ;;  %v2922_v57 = vld [vmem:[#allocation9_spill] sm:$0xff]  ;;  %v2924_v3 = vld [vmem:[#allocation10_spill] sm:$0xff]  ;;  %v2927_v22 = vld [vmem:[#allocation15_spill] sm:$0xff] }
  0x58   :  { %v47_v18 = vmax.f32 %v43_v45, 0.0  ;;  %v74_v6 = vadd.f32 %v2920_v10, %v65_v25  ;;  %v135_v37 = vmul.f32 %v2921_v29, %v2195_v28  ;;  %v996_v2 = vmul.f32 %v2037_v1, %v987_v38  ;;  %v2926_v45 = vld [vmem:[#allocation17_spill] sm:$0xff]  ;;  %v2930_v1 = vld [vmem:[#allocation19_spill] sm:$0xff] }
  0x59   :  { %v755_v4 = vadd.f32 %v751_v5, %v720_v27  ;;  %v109_v46 = vadd.f32 %v2922_v57, %v100_v8  ;;  %v170_v49 = vmul.f32 %v2923_v23, %v2195_v28  ;;  %v205_v32 = vmul.f32 %v2926_v45, %v2195_v28  ;;  %v2928_v27 = vld [vmem:[#allocation20_spill] sm:$0xff]  ;;  %v2929_v38 = vld [vmem:[#allocation13_spill] sm:$0xff] }
  0x5a   :  { %v56_v48 = vmul.f32 %v2924_v3, %v47_v18  ;;  %v78_v7 = vmax.f32 %v74_v6, 0.0  ;;  %v144_v14 = vadd.f32 %v2925_v21, %v135_v37  ;;  %v240_v5 = vmul.f32 %v2928_v27, %v2195_v28  ;;  %v2931_v3 = vld [vmem:[#allocation21_spill] sm:$0xff]  ;;  %v2932_v21 = vld [vmem:[#allocation16_spill] sm:$0xff] }
  0x5b   :  { %v790_v25 = vadd.f32 %v786_v39, %v755_v4  ;;  %v113_v10 = vmax.f32 %v109_v46, 0.0  ;;  %v179_v29 = vadd.f32 %v2927_v22, %v170_v49  ;;  %v214_v23 = vadd.f32 %v2930_v1, %v205_v32  ;;  %v2933_v46 = vld [vmem:[#allocation18_spill] sm:$0xff] }
  0x5c   :  { %v87_v8 = vmul.f32 %v2929_v38, %v78_v7  ;;  %v148_v57 = vmax.f32 %v144_v14, 0.0  ;;  %v275_v18 = vmul.f32 %v2931_v3, %v2195_v28  ;;  %v249_v39 = vadd.f32 %v1560_v34, %v240_v5  ;;  %v2935_v3 = vld [vmem:[#allocation24_spill] sm:$0xff] }
  0x5d   :  { %v825_v6 = vadd.f32 %v821_v12, %v790_v25  ;;  %v122_v37 = vmul.f32 %v2932_v21, %v113_v10  ;;  %v183_v15 = vmax.f32 %v179_v29, 0.0  ;;  %v218_v49 = vmax.f32 %v214_v23, 0.0  ;;  %v2937_v21 = vld [vmem:[#allocation26_spill] sm:$0xff] }
  0x5e   :  { %v91_v4 = vadd.f32 %v87_v8, %v56_v48  ;;  %v157_v22 = vmul.f32 %v2933_v46, %v148_v57  ;;  %v284_v45 = vadd.f32 %v1582_v44, %v275_v18  ;;  %v1057_v7 = vmax.f32 %v1053_v33, 0.0 }
  0x5f   :  { %v860_v27 = vadd.f32 %v856_v20, %v825_v6  ;;  %v253_v14 = vmax.f32 %v249_v39, 0.0  ;;  %v310_v1 = vmul.f32 %v1591_v50, %v2195_v28  ;;  %v1123_v32 = vadd.f32 %v2102_v0, %v1114_v36  ;;  %v2936_v6 = vld [vmem:[#allocation25_spill] sm:$0xff] }
  0x60   :  { %v126_v12 = vadd.f32 %v122_v37, %v91_v4  ;;  %v192_v25 = vmul.f32 %v1575_v42, %v183_v15  ;;  %v345_v34 = vmul.f32 %v1609_v55, %v2195_v28  ;;  %v227_v10 = vmul.f32 %v1601_v52, %v218_v49  ;;  %v2938_v37 = vld [vmem:[#allocation23_spill] sm:$0xff]  ;;  %v2940_v49 = vld [vmem:[#allocation78_spill] sm:$0xff] }
  0x61   :  { %v895_v48 = vadd.f32 %v891_v47, %v860_v27  ;;  %v319_v29 = vadd.f32 %v1596_v51, %v310_v1  ;;  %v380_v44 = vmul.f32 %v1624_v62, %v2195_v28  ;;  %v288_v33 = vmax.f32 %v284_v45, 0.0  ;;  %v2941_v27 = vld [vmem:[#allocation27_spill] sm:$0xff] }
  0x62   :  { %v161_v20 = vadd.f32 %v157_v22, %v126_v12  ;;  %v354_v50 = vadd.f32 %v1614_v56, %v345_v34  ;;  %v415_v36 = vmul.f32 %v1650_v24, %v2195_v28  ;;  %v1031_v42 = vmul.f32 %v2062_v13, %v1022_v11  ;;  %v2934_v11 = vld [vmem:[#allocation22_spill] sm:$0xff]  ;;  %v2944_v34 = vld [vmem:[#allocation79_spill] sm:$0xff] }
  0x63   :  { %v930_v5 = vadd.f32 %v926_v26, %v895_v48  ;;  %v262_v55 = vmul.f32 %v1629_v63, %v253_v14  ;;  %v450_v52 = vmul.f32 %v1662_v31, %v2195_v28  ;;  %v323_v51 = vmax.f32 %v319_v29, 0.0 }
  0x64   :  { %v196_v15 = vadd.f32 %v192_v25, %v161_v20  ;;  %v389_v47 = vadd.f32 %v1637_v9, %v380_v44  ;;  %v485_v62 = vmul.f32 %v1682_v43, %v2195_v28  ;;  %v1066_v56 = vmul.f32 %v2119_v16, %v1057_v7  ;;  %v2942_v7 = vld [vmem:[#allocation28_spill] sm:$0xff] }
  0x65   :  { %v965_v38 = vadd.f32 %v961_v19, %v930_v5  ;;  %v1092_v24 = vmax.f32 %v2224_v40, 0.0  ;;  %v1127_v26 = vmax.f32 %v1123_v32, 0.0  ;;  %v297_v57 = vmul.f32 %v2934_v11, %v288_v33  ;;  %v2939_v40 = vld [vmem:[#allocation29_spill] sm:$0xff]  ;;  %v2943_v32 = vld [vmem:[#allocation31_spill] sm:$0xff]  ;;  %v2945_v20 = vld [vmem:[#allocation32_spill] sm:$0xff] }
  0x66   :  { %v231_v8 = vadd.f32 %v227_v10, %v196_v15  ;;  %v358_v63 = vmax.f32 %v354_v50, 0.0  ;;  %v424_v23 = vadd.f32 %v1657_v30, %v415_v36  ;;  %v459_v18 = vadd.f32 %v2935_v3, %v450_v52  ;;  %v2946_v50 = vld [vmem:[#allocation30_spill] sm:$0xff]  ;;  %v2947_v5 = vld [vmem:[#allocation35_spill] sm:$0xff]  ;;  %v2948_v15 = vld [vmem:[#allocation37_spill] sm:$0xff] }
  0x67   :  { %v1000_v31 = vadd.f32 %v996_v2, %v965_v38  ;;  %v494_v9 = vadd.f32 %v2936_v6, %v485_v62  ;;  %v520_v43 = vmul.f32 %v2937_v21, %v2195_v28  ;;  %v332_v39 = vmul.f32 %v2938_v37, %v323_v51  ;;  %v2949_v62 = vld [vmem:[#allocation33_spill] sm:$0xff]  ;;  %v2954_v3 = vld [vmem:[#allocation46_spill] sm:$0xff]  ;;  %v2955_v21 = vld [vmem:[#allocation36_spill] sm:$0xff] }
  0x68   :  { %v266_v19 = vadd.f32 %v262_v55, %v231_v8  ;;  %v393_v4 = vmax.f32 %v389_v47, 0.0  ;;  %v555_v46 = vmul.f32 %v2939_v40, %v2195_v28  ;;  %v1101_v45 = vmul.f32 %v2940_v49, %v1092_v24 }
  0x69   :  { %v1035_v22 = vadd.f32 %v1031_v42, %v1000_v31  ;;  %v529_v30 = vadd.f32 %v2941_v27, %v520_v43  ;;  %v367_v14 = vmul.f32 %v2942_v7, %v358_v63  ;;  %v428_v1 = vmax.f32 %v424_v23, 0.0  ;;  %v2953_v23 = vld [vmem:[#allocation40_spill] sm:$0xff] }
  0x6a   :  { %v301_v2 = vadd.f32 %v297_v57, %v266_v19  ;;  %v590_v12 = vmul.f32 %v2943_v32, %v2195_v28  ;;  %v1136_v48 = vmul.f32 %v2944_v34, %v1127_v26  ;;  %v463_v10 = vmax.f32 %v459_v18, 0.0  ;;  %v2951_v26 = vld [vmem:[#allocation41_spill] sm:$0xff]  ;;  %v2952_v57 = vld [vmem:[#allocation39_spill] sm:$0xff]  ;;  %v2961_v32 = vld [vmem:[#allocation48_spill] sm:$0xff] }
  0x6b   :  { %v1070_v25 = vadd.f32 %v1066_v56, %v1035_v22  ;;  %v498_v29 = vmax.f32 %v494_v9, 0.0  ;;  %v402_v33 = vmul.f32 %v2945_v20, %v393_v4  ;;  %v564_v36 = vadd.f32 %v2946_v50, %v555_v46  ;;  %v2950_v56 = vld [vmem:[#allocation34_spill] sm:$0xff]  ;;  %v2956_v19 = vld [vmem:[#allocation49_spill] sm:$0xff] }
  0x6c   :  { %v336_v44 = vadd.f32 %v332_v39, %v301_v2  ;;  %v625_v42 = vmul.f32 %v2947_v5, %v2195_v28  ;;  %v533_v52 = vmax.f32 %v529_v30, 0.0  ;;  %v660_v51 = vmul.f32 %v2948_v15, %v2195_v28  ;;  %v2957_v4 = vld [vmem:[#allocation42_spill] sm:$0xff] }
  0x6d   :  { %v1105_v55 = vadd.f32 %v1101_v45, %v1070_v25  ;;  %v437_v38 = vmul.f32 %v2949_v62, %v428_v1  ;;  %v599_v24 = vadd.f32 %v2950_v56, %v590_v12  ;;  %v695_v8 = vmul.f32 %v2951_v26, %v2195_v28  ;;  %v2958_v46 = vld [vmem:[#allocation38_spill] sm:$0xff]  ;;  %v2959_v45 = vld [vmem:[#allocation51_spill] sm:$0xff] }
  0x6e   :  { %v371_v47 = vadd.f32 %v367_v14, %v336_v44  ;;  %v472_v63 = vmul.f32 %v2952_v57, %v463_v10  ;;  %v507_v31 = vmul.f32 %v2953_v23, %v498_v29  ;;  %v730_v18 = vmul.f32 %v2954_v3, %v2195_v28  ;;  %v2960_v14 = vld [vmem:[#allocation54_spill] sm:$0xff]  ;;  %v2963_v10 = vld [vmem:[#allocation56_spill] sm:$0xff] }
  0x6f   :  { %v1140_v11 = vadd.f32 %v1136_v48, %v1105_v55  ;;  %v568_v9 = vmax.f32 %v564_v36, 0.0  ;;  %v634_v43 = vadd.f32 %v2955_v21, %v625_v42  ;;  %v765_v37 = vmul.f32 %v2956_v19, %v2195_v28  ;;  %v2962_v25 = vld [vmem:[#allocation50_spill] sm:$0xff]  ;;  %v2965_v36 = vld [vmem:[#allocation53_spill] sm:$0xff]  ;;  %v2968_v57 = vld [vmem:[#allocation44_spill] sm:$0xff] }
  0x70   :  { %v406_v6 = vadd.f32 %v402_v33, %v371_v47  ;;  %v542_v40 = vmul.f32 %v2957_v4, %v533_v52  ;;  %v669_v22 = vadd.f32 %v2958_v46, %v660_v51  ;;  %v800_v27 = vmul.f32 %v2959_v45, %v2195_v28  ;;  %v2964_v33 = vld [vmem:[#allocation43_spill] sm:$0xff]  ;;  %v2971_v46 = vld [vmem:[#allocation66_spill] sm:$0xff]  ;;  %v1344_v45 = vld [vmem:[%s2667_s2] ss:$0 sm:$0xff] }
  0x71   :  { %v1149_v39 = vsel %vm1142_vm0, %v1140_v11, 0.0  ;;  %v603_v2 = vmax.f32 %v599_v24, 0.0  ;;  %v704_v7 = vadd.f32 %v2894_v53, %v695_v8  ;;  %v835_v1 = vmul.f32 %v2960_v14, %v2195_v28  ;;  %v2966_v52 = vld [vmem:[#allocation55_spill] sm:$0xff]  ;;  %v2973_v14 = vld [vmem:[#allocation64_spill] sm:$0xff] }
  0x72   :  { %1150 = vadd.xlane.f32.xlu1 %v1149_v39  ;;  %v441_v30 = vadd.f32 %v437_v38, %v406_v6  ;;  %v739_v12 = vadd.f32 %v2961_v32, %v730_v18  ;;  %v774_v48 = vadd.f32 %v2962_v25, %v765_v37  ;;  %v870_v29 = vmul.f32 %v2963_v10, %v2195_v28  ;;  %v2967_v38 = vld [vmem:[#allocation59_spill] sm:$0xff]  ;;  %v2330_v18 = vld [vmem:[%s2666_s1 + $0x8] sm:$0xff]  ;;  %v2970_v6 = vld [vmem:[#allocation52_spill] sm:$0xff] }
  0x73   :  { %v905_v44 = vmul.f32 %v2903_v59, %v2195_v28  ;;  %v577_v50 = vmul.f32 %v2964_v33, %v568_v9  ;;  %v809_v5 = vadd.f32 %v2965_v36, %v800_v27  ;;  %v940_v53 = vmul.f32 %v2907_v41, %v2195_v28  ;;  %v1345_v32 = vld [vmem:[%s2667_s2 + $0x1] ss:$0 sm:$0xff]  ;;  %v2974_v25 = vld [vmem:[#allocation67_spill] sm:$0xff] }
  0x74   :  { %v476_v20 = vadd.f32 %v472_v63, %v441_v30  ;;  %v638_v42 = vmax.f32 %v634_v43, 0.0  ;;  %v673_v55 = vmax.f32 %v669_v22, 0.0  ;;  %v844_v15 = vadd.f32 %v2966_v52, %v835_v1 }
  0x75   :  { %v879_v51 = vadd.f32 %v2904_v60, %v870_v29  ;;  %v708_v62 = vmax.f32 %v704_v7, 0.0  ;;  %v914_v56 = vadd.f32 %v2967_v38, %v905_v44  ;;  %v949_v24 = vadd.f32 %v2909_v58, %v940_v53  ;;  %v2969_v60 = vld [vmem:[#allocation47_spill] sm:$0xff]  ;;  %v2975_v29 = vld [vmem:[#allocation69_spill] sm:$0xff]  ;;  %v2980_v38 = vld [vmem:[#allocation72_spill] sm:$0xff] }
  0x76   :  { %v511_v47 = vadd.f32 %v507_v31, %v476_v20  ;;  %v743_v26 = vmax.f32 %v739_v12, 0.0  ;;  %v778_v8 = vmax.f32 %v774_v48, 0.0  ;;  %v612_v63 = vmul.f32 %v2968_v57, %v603_v2  ;;  %v2972_v2 = vld [vmem:[#allocation65_spill] sm:$0xff]  ;;  %v2976_v20 = vld [vmem:[#allocation70_spill] sm:$0xff]  ;;  %v2977_v53 = vld [vmem:[#allocation71_spill] sm:$0xff] }
  0x77   :  { %v813_v23 = vmax.f32 %v809_v5, 0.0  ;;  %v975_v3 = vmul.f32 %v2908_v17, %v2195_v28  ;;  %v647_v31 = vmul.f32 %v2969_v60, %v638_v42  ;;  %v682_v9 = vmul.f32 %v2970_v6, %v673_v55  ;;  %v2978_v55 = vld [vmem:[#allocation73_spill] sm:$0xff]  ;;  %v2981_v60 = vld [vmem:[#allocation74_spill] sm:$0xff]  ;;  %v1350_v6 = vld [vmem:[%s2669_s4] ss:$0 sm:$0xff] }
  0x78   :  { %v546_v11 = vadd.f32 %v542_v40, %v511_v47  ;;  %v848_v21 = vmax.f32 %v844_v15, 0.0  ;;  %v883_v58 = vmax.f32 %v879_v51, 0.0  ;;  %v717_v19 = vmul.f32 %v2912_v61, %v708_v62  ;;  %v1347_v15 = vld [vmem:[%s2668_s3 + $0x1] ss:$0 sm:$0xff] }
  0x79   :  { %v918_v37 = vmax.f32 %v914_v56, 0.0  ;;  %v953_v39 = vmax.f32 %v949_v24, 0.0  ;;  %v752_v4 = vmul.f32 %v1942_v54, %v743_v26  ;;  %v787_v40 = vmul.f32 %v1947_v35, %v778_v8  ;;  %v2979_v47 = vld [vmem:[#allocation68_spill] sm:$0xff] }
  0x7a   :  { %v581_v43 = vadd.f32 %v577_v50, %v546_v11  ;;  %v1010_v22 = vmul.f32 %v2971_v46, %v2195_v28  ;;  %v32_v27 = vmul.f32 %v1344_v45, %v2330_v18  ;;  %v2344_v7 = vmul.f32 %v2972_v2, %v813_v23  ;;  %v1346_v50 = vld [vmem:[%s2668_s3] ss:$0 sm:$0xff]  ;;  %v1348_v26 = vld [vmem:[%s2667_s2 + $0x2] ss:$0 sm:$0xff]  ;;  %v1349_v23 = vld [vmem:[%s2667_s2 + $0x3] ss:$0 sm:$0xff] }
  0x7b   :  { %v2347_v1 = vadd.f32 %v2973_v14, %v975_v3  ;;  %v63_v12 = vmul.f32 %v1345_v32, %v2330_v18  ;;  %v2354_v48 = vmul.f32 %v2974_v25, %v848_v21  ;;  %v2357_v44 = vmul.f32 %v2975_v29, %v883_v58  ;;  %v1355_v32 = vld [vmem:[%s2667_s2 + $0x5] ss:$0 sm:$0xff] }
  0x7c   :  { %v616_v30 = vadd.f32 %v612_v63, %v581_v43  ;;  %v1045_v33 = vmul.f32 %v2976_v20, %v2195_v28  ;;  %v41_v36 = vadd.f32 %v1346_v50, %v32_v27  ;;  %v2365_v42 = vmul.f32 %v2977_v53, %v918_v37  ;;  %v1352_v43 = vld [vmem:[%s2667_s2 + $0x4] ss:$0 sm:$0xff]  ;;  %v1354_v27 = vld [vmem:[%s2668_s3 + $0x3] ss:$0 sm:$0xff] }
  0x7d   :  { %v2368_v52 = vmul.f32 %v2978_v55, %v953_v39  ;;  %v72_v51 = vadd.f32 %v1347_v15, %v63_v12  ;;  %v2374_v62 = vadd.f32 %v2979_v47, %v1010_v22  ;;  %v2378_v56 = vmul.f32 %v2980_v38, %v2195_v28  ;;  %v1353_v22 = vld [vmem:[%s2669_s4 + $0x1] ss:$0 sm:$0xff]  ;;  %v1358_v15 = vld [vmem:[%s2667_s2 + $0x7] ss:$0 sm:$0xff] }
  0x7e   :  { %v651_v5 = vadd.f32 %v647_v31, %v616_v30  ;;  %v45_v24 = vmax.f32 %v41_v36, 0.0  ;;  %v98_v8 = vmul.f32 %v1348_v26, %v2330_v18  ;;  %v988_v57 = vmax.f32 %v2347_v1, 0.0  ;;  %v1357_v36 = vld [vmem:[%s2667_s2 + $0x6] ss:$0 sm:$0xff]  ;;  %v1377_v1 = vld [vmem:[%s2668_s3 + $0xb] ss:$0 sm:$0xff] }
  0x7f   :  { %v76_v63 = vmax.f32 %v72_v51, 0.0  ;;  %v133_v3 = vmul.f32 %v1349_v23, %v2330_v18  ;;  %v2390_v31 = vadd.f32 %v2981_v60, %v1045_v33  ;;  %v168_v37 = vmul.f32 %v1352_v43, %v2330_v18  ;;  %v1360_v23 = vld [vmem:[%s2669_s4 + $0x2] ss:$0 sm:$0xff] }
  0x80   :  { %v686_v11 = vadd.f32 %v682_v9, %v651_v5  ;;  %v54_v21 = vmul.f32 %v1350_v6, %v45_v24  ;;  %v1351_v9 = vld [vmem:[%s2668_s3 + $0x2] ss:$0 sm:$0xff]  ;;  %v203_v12 = vmul.f32 %v1355_v32, %v2330_v18  ;;  %v238_v5 = vmul.f32 %v1357_v36, %v2330_v18 }
  0x81   :  { %v107_v58 = vadd.f32 %v1351_v9, %v98_v8  ;;  %v85_v45 = vmul.f32 %v1353_v22, %v76_v63  ;;  %v142_v30 = vadd.f32 %v1354_v27, %v133_v3  ;;  %v273_v51 = vmul.f32 %v1358_v15, %v2330_v18  ;;  %v1361_v9 = vld [vmem:[%s2668_s3 + $0x6] ss:$0 sm:$0xff] }
  0x82   :  { %v721_v39 = vadd.f32 %v717_v19, %v686_v11  ;;  %v1356_v19 = vld [vmem:[%s2668_s3 + $0x4] ss:$0 sm:$0xff]  ;;  %v1359_v11 = vld [vmem:[%s2668_s3 + $0x5] ss:$0 sm:$0xff]  ;;  %v1023_v36 = vmax.f32 %v2374_v62, 0.0 }
  0x83   :  { %v111_v33 = vmax.f32 %v107_v58, 0.0  ;;  %v177_v50 = vadd.f32 %v1356_v19, %v168_v37  ;;  %v89_v26 = vadd.f32 %v85_v45, %v54_v21  ;;  %v146_v8 = vmax.f32 %v142_v30, 0.0  ;;  %v1363_v37 = vld [vmem:[%s2669_s4 + $0x3] ss:$0 sm:$0xff]  ;;  %v1364_v45 = vld [vmem:[%s2667_s2 + $0x8] ss:$0 sm:$0xff] }
  0x84   :  { %v756_v24 = vadd.f32 %v752_v4, %v721_v39  ;;  %v212_v63 = vadd.f32 %v1359_v11, %v203_v12  ;;  %v247_v58 = vadd.f32 %v1361_v9, %v238_v5  ;;  %v1362_v4 = vld [vmem:[%s2668_s3 + $0x7] ss:$0 sm:$0xff]  ;;  %v308_v27 = vmul.f32 %v1364_v45, %v2330_v18  ;;  %v1366_v5 = vld [vmem:[%s2668_s3 + $0x8] ss:$0 sm:$0xff]  ;;  %v1369_v62 = vld [vmem:[%s2667_s2 + $0xa] ss:$0 sm:$0xff] }
  0x85   :  { %v120_v3 = vmul.f32 %v1360_v23, %v111_v33  ;;  %v181_v6 = vmax.f32 %v177_v50, 0.0  ;;  %v282_v21 = vadd.f32 %v1362_v4, %v273_v51  ;;  %v155_v39 = vmul.f32 %v1363_v37, %v146_v8  ;;  %v2982_v30 = vld [vmem:[#allocation76_spill] sm:$0xff]  ;;  %v1371_v9 = vld [vmem:[%s2667_s2 + $0xb] ss:$0 sm:$0xff] }
  0x86   :  { %v791_v43 = vadd.f32 %v787_v40, %v756_v24  ;;  %v216_v22 = vmax.f32 %v212_v63, 0.0  ;;  %v1115_v32 = vmul.f32 %v2982_v30, %v2195_v28  ;;  %v1365_v40 = vld [vmem:[%s2669_s4 + $0x4] ss:$0 sm:$0xff]  ;;  %v251_v19 = vmax.f32 %v247_v58, 0.0  ;;  %v1367_v28 = vld [vmem:[%s2667_s2 + $0x9] ss:$0 sm:$0xff] }
  0x87   :  { %v124_v12 = vadd.f32 %v120_v3, %v89_v26  ;;  %v190_v33 = vmul.f32 %v1365_v40, %v181_v6  ;;  %v317_v15 = vadd.f32 %v1366_v5, %v308_v27  ;;  %v343_v51 = vmul.f32 %v1367_v28, %v2330_v18  ;;  %v1368_v26 = vld [vmem:[%s2669_s4 + $0x5] ss:$0 sm:$0xff]  ;;  %v1370_v3 = vld [vmem:[%s2668_s3 + $0x9] ss:$0 sm:$0xff]  ;;  %v2983_v27 = vld [vmem:[#allocation75_spill] sm:$0xff] }
  0x88   :  { %v826_v50 = vadd.f32 %v2344_v7, %v791_v43  ;;  %v225_v8 = vmul.f32 %v1368_v26, %v216_v22  ;;  %v286_v7 = vmax.f32 %v282_v21, 0.0  ;;  %v378_v11 = vmul.f32 %v1369_v62, %v2330_v18  ;;  %v1372_v21 = vld [vmem:[%s2669_s4 + $0x6] ss:$0 sm:$0xff]  ;;  %v2984_v40 = vld [vmem:[#allocation77_spill] sm:$0xff] }
  0x89   :  { %v159_v24 = vadd.f32 %v155_v39, %v124_v12  ;;  %v321_v23 = vmax.f32 %v317_v15, 0.0  ;;  %v352_v6 = vadd.f32 %v1370_v3, %v343_v51  ;;  %v413_v58 = vmul.f32 %v1371_v9, %v2330_v18  ;;  %v1374_v39 = vld [vmem:[%s2667_s2 + $0xc] ss:$0 sm:$0xff]  ;;  %v1376_v15 = vld [vmem:[%s2669_s4 + $0x7] ss:$0 sm:$0xff] }
  0x8a   :  { %v861_v63 = vadd.f32 %v2354_v48, %v826_v50  ;;  %v260_v43 = vmul.f32 %v1372_v21, %v251_v19  ;;  %v1373_v48 = vld [vmem:[%s2668_s3 + $0xa] ss:$0 sm:$0xff]  ;;  %v448_v22 = vmul.f32 %v1374_v39, %v2330_v18  ;;  %v997_v12 = vmul.f32 %v2983_v27, %v988_v57  ;;  %v1375_v19 = vld [vmem:[%s2667_s2 + $0xd] ss:$0 sm:$0xff]  ;;  %v1378_v26 = vld [vmem:[%s2669_s4 + $0x8] ss:$0 sm:$0xff] }
  0x8b   :  { %v194_v4 = vadd.f32 %v190_v33, %v159_v24  ;;  %v387_v37 = vadd.f32 %v1373_v48, %v378_v11  ;;  %v1089_v33 = vadd.f32 %v2984_v40, %v2378_v56  ;;  %v483_v50 = vmul.f32 %v1375_v19, %v2330_v18  ;;  %v1383_v48 = vld [vmem:[%s2667_s2 + $0xf] ss:$0 sm:$0xff]  ;;  %v1385_v19 = vld [vmem:[%s2669_s4 + $0xa] ss:$0 sm:$0xff] }
  0x8c   :  { %v896_v45 = vadd.f32 %v2357_v44, %v861_v63  ;;  %v295_v28 = vmul.f32 %v1376_v15, %v286_v7  ;;  %v356_v44 = vmax.f32 %v352_v6, 0.0  ;;  %v422_v57 = vadd.f32 %v1377_v1, %v413_v58  ;;  %v1379_v7 = vld [vmem:[%s2668_s3 + $0xc] ss:$0 sm:$0xff] }
  0x8d   :  { %v229_v5 = vadd.f32 %v225_v8, %v194_v4  ;;  %v1058_v51 = vmax.f32 %v2390_v31, 0.0  ;;  %v1124_v24 = vadd.f32 %v2102_v0, %v1115_v32  ;;  %v330_v8 = vmul.f32 %v1378_v26, %v321_v23  ;;  %v1381_v23 = vld [vmem:[%s2668_s3 + $0xd] ss:$0 sm:$0xff]  ;;  %v1382_v4 = vld [vmem:[%s2669_s4 + $0x9] ss:$0 sm:$0xff] }
  0x8e   :  { %v931_v56 = vadd.f32 %v2365_v42, %v896_v45  ;;  %v391_v11 = vmax.f32 %v387_v37, 0.0  ;;  %v457_v63 = vadd.f32 %v1379_v7, %v448_v22  ;;  %v1380_v42 = vld [vmem:[%s2667_s2 + $0xe] ss:$0 sm:$0xff]  ;;  %v1032_v3 = vmul.f32 %v2062_v13, %v1023_v36  ;;  %v1384_v22 = vld [vmem:[%s2667_s2 + $0x10] ss:$0 sm:$0xff] }
  0x8f   :  { %v264_v62 = vadd.f32 %v260_v43, %v229_v5  ;;  %v518_v31 = vmul.f32 %v1380_v42, %v2330_v18  ;;  %v1093_v6 = vmax.f32 %v1089_v33, 0.0  ;;  %v492_v9 = vadd.f32 %v1381_v23, %v483_v50  ;;  %v1392_v23 = vld [vmem:[%s2667_s2 + $0x12] ss:$0 sm:$0xff] }
  0x90   :  { %v966_v32 = vadd.f32 %v2368_v52, %v931_v56  ;;  %v365_v21 = vmul.f32 %v1382_v4, %v356_v44  ;;  %v426_v43 = vmax.f32 %v422_v57, 0.0  ;;  %v553_v52 = vmul.f32 %v1383_v48, %v2330_v18  ;;  %v1387_v56 = vld [vmem:[%s2669_s4 + $0xb] ss:$0 sm:$0xff]  ;;  %v1393_v4 = vld [vmem:[%s2667_s2 + $0x13] ss:$0 sm:$0xff] }
  0x91   :  { %v299_v58 = vadd.f32 %v295_v28, %v264_v62  ;;  %v1067_v37 = vmul.f32 %v2119_v16, %v1058_v51  ;;  %v1128_v39 = vmax.f32 %v1124_v24, 0.0  ;;  %v588_v45 = vmul.f32 %v1384_v22, %v2330_v18  ;;  %v1388_v24 = vld [vmem:[%s2668_s3 + $0xf] ss:$0 sm:$0xff]  ;;  %v1394_v48 = vld [vmem:[%s2669_s4 + $0xd] ss:$0 sm:$0xff] }
  0x92   :  { %v1001_v36 = vadd.f32 %v997_v12, %v966_v32  ;;  %v400_v50 = vmul.f32 %v1385_v19, %v391_v11  ;;  %v461_v5 = vmax.f32 %v457_v63, 0.0  ;;  %v1386_v12 = vld [vmem:[%s2668_s3 + $0xe] ss:$0 sm:$0xff]  ;;  %v1102_v44 = vmul.f32 %v2940_v49, %v1093_v6  ;;  %v1390_v63 = vld [vmem:[%s2668_s3 + $0x10] ss:$0 sm:$0xff] }
  0x93   :  { %v334_v33 = vadd.f32 %v330_v8, %v299_v58  ;;  %v527_v15 = vadd.f32 %v1386_v12, %v518_v31  ;;  %v496_v1 = vmax.f32 %v492_v9, 0.0  ;;  %v435_v51 = vmul.f32 %v1387_v56, %v426_v43  ;;  %v1389_v8 = vld [vmem:[%s2667_s2 + $0x11] ss:$0 sm:$0xff]  ;;  %v1391_v32 = vld [vmem:[%s2669_s4 + $0xc] ss:$0 sm:$0xff] }
  0x94   :  { %v1036_v28 = vadd.f32 %v1032_v3, %v1001_v36  ;;  %v562_v26 = vadd.f32 %v1388_v24, %v553_v52  ;;  %v623_v62 = vmul.f32 %v1389_v8, %v2330_v18  ;;  %v1137_v7 = vmul.f32 %v2944_v34, %v1128_v39  ;;  %v1396_v19 = vld [vmem:[%s2669_s4 + $0xe] ss:$0 sm:$0xff]  ;;  %v1401_v8 = vld [vmem:[%s2667_s2 + $0x15] ss:$0 sm:$0xff] }
  0x95   :  { %v369_v57 = vadd.f32 %v365_v21, %v334_v33  ;;  %v597_v42 = vadd.f32 %v1390_v63, %v588_v45  ;;  %v470_v3 = vmul.f32 %v1391_v32, %v461_v5  ;;  %v531_v6 = vmax.f32 %v527_v15, 0.0  ;;  %v1397_v5 = vld [vmem:[%s2668_s3 + $0x12] ss:$0 sm:$0xff]  ;;  %v1398_v15 = vld [vmem:[%s2667_s2 + $0x14] ss:$0 sm:$0xff] }
  0x96   :  { %v1071_v11 = vadd.f32 %v1067_v37, %v1036_v28  ;;  %v658_v9 = vmul.f32 %v1392_v23, %v2330_v18  ;;  %v693_v21 = vmul.f32 %v1393_v4, %v2330_v18  ;;  %v505_v52 = vmul.f32 %v1394_v48, %v496_v1  ;;  %v1395_v37 = vld [vmem:[%s2668_s3 + $0x11] ss:$0 sm:$0xff]  ;;  %v1399_v1 = vld [vmem:[%s2668_s3 + $0x13] ss:$0 sm:$0xff]  ;;  %v1407_v48 = vld [vmem:[%s2667_s2 + $0x17] ss:$0 sm:$0xff] }
  0x97   :  { %v404_v31 = vadd.f32 %v400_v50, %v369_v57  ;;  %v566_v36 = vmax.f32 %v562_v26, 0.0  ;;  %v632_v39 = vadd.f32 %v1395_v37, %v623_v62  ;;  %v601_v45 = vmax.f32 %v597_v42, 0.0 }
  0x98   :  { %v1106_v58 = vadd.f32 %v1102_v44, %v1071_v11  ;;  %v540_v50 = vmul.f32 %v1396_v19, %v531_v6  ;;  %v667_v12 = vadd.f32 %v1397_v5, %v658_v9  ;;  %v728_v28 = vmul.f32 %v1398_v15, %v2330_v18  ;;  %v1402_v11 = vld [vmem:[%s2669_s4 + $0x10] ss:$0 sm:$0xff] }
  0x99   :  { %v439_v43 = vadd.f32 %v435_v51, %v404_v31  ;;  %v702_v57 = vadd.f32 %v1399_v1, %v693_v21  ;;  %v1400_v51 = vld [vmem:[%s2669_s4 + $0xf] ss:$0 sm:$0xff]  ;;  %v636_v26 = vmax.f32 %v632_v39, 0.0  ;;  %v763_v62 = vmul.f32 %v1401_v8, %v2330_v18  ;;  %v1403_v31 = vld [vmem:[%s2668_s3 + $0x14] ss:$0 sm:$0xff] }
  0x9a   :  { %v1141_v22 = vadd.f32 %v1137_v7, %v1106_v58  ;;  %v575_v24 = vmul.f32 %v1400_v51, %v566_v36  ;;  %v610_v7 = vmul.f32 %v1402_v11, %v601_v45  ;;  %v671_v42 = vmax.f32 %v667_v12, 0.0  ;;  %v1405_v58 = vld [vmem:[%s2669_s4 + $0x11] ss:$0 sm:$0xff]  ;;  %v1406_v21 = vld [vmem:[%s2668_s3 + $0x15] ss:$0 sm:$0xff] }
  0x9b   :  { %v474_v33 = vadd.f32 %v470_v3, %v439_v43  ;;  %v737_v32 = vadd.f32 %v1403_v31, %v728_v28  ;;  %v1404_v3 = vld [vmem:[%s2667_s2 + $0x16] ss:$0 sm:$0xff]  ;;  %v706_v23 = vmax.f32 %v702_v57, 0.0  ;;  %v645_v4 = vmul.f32 %v1405_v58, %v636_v26  ;;  %v1408_v39 = vld [vmem:[%s2669_s4 + $0x12] ss:$0 sm:$0xff] }
  0x9c   :  { %v1152_v44 = vsel %vm1142_vm0, %v1141_v22, 0.0  ;;  %v798_v6 = vmul.f32 %v1404_v3, %v2330_v18  ;;  %v772_v43 = vadd.f32 %v1406_v21, %v763_v62  ;;  %v868_v36 = vmul.f32 %v2963_v10, %v2330_v18  ;;  %v1410_v10 = vld [vmem:[%s2668_s3 + $0x17] ss:$0 sm:$0xff] }
  0x9d   :  { %1153 = vadd.xlane.f32.xlu1 %v1152_v44  ;;  %v509_v56 = vadd.f32 %v505_v52, %v474_v33  ;;  %v833_v52 = vmul.f32 %v1407_v48, %v2330_v18  ;;  %v680_v22 = vmul.f32 %v1408_v39, %v671_v42  ;;  %v741_v45 = vmax.f32 %v737_v32, 0.0  ;;  %v1409_v33 = vld [vmem:[%s2668_s3 + $0x16] ss:$0 sm:$0xff]  ;;  %v1411_v44 = vld [vmem:[%s2668_s3 + $0x18] ss:$0 sm:$0xff] }
  0x9e   :  { %v807_v19 = vadd.f32 %v1409_v33, %v798_v6  ;;  %v715_v12 = vmul.f32 %v2912_v61, %v706_v23  ;;  %v776_v15 = vmax.f32 %v772_v43, 0.0  ;;  %v877_v1 = vadd.f32 %v1411_v44, %v868_v36  ;;  %v1412_v61 = vld [vmem:[%s2668_s3 + $0x19] ss:$0 sm:$0xff] }
  0x9f   :  { %v544_v63 = vadd.f32 %v540_v50, %v509_v56  ;;  %v903_v50 = vmul.f32 %v2903_v59, %v2330_v18  ;;  %v842_v28 = vadd.f32 %v1410_v10, %v833_v52  ;;  %v750_v56 = vmul.f32 %v1942_v54, %v741_v45 }
  0xa0   :  { %v811_v51 = vmax.f32 %v807_v19, 0.0  ;;  %v938_v59 = vmul.f32 %v2907_v41, %v2330_v18  ;;  %v785_v8 = vmul.f32 %v1947_v35, %v776_v15  ;;  %v973_v11 = vmul.f32 %v2908_v17, %v2330_v18  ;;  %v1413_v41 = vld [vmem:[%s2668_s3 + $0x1a] ss:$0 sm:$0xff] }
  0xa1   :  { %v579_v9 = vadd.f32 %v575_v24, %v544_v63  ;;  %v912_v24 = vadd.f32 %v1412_v61, %v903_v50  ;;  %v846_v62 = vmax.f32 %v842_v28, 0.0  ;;  %v1008_v31 = vmul.f32 %v2971_v46, %v2330_v18 }
  0xa2   :  { %v820_v54 = vmul.f32 %v2972_v2, %v811_v51  ;;  %v947_v42 = vadd.f32 %v1413_v41, %v938_v59  ;;  %v982_v6 = vadd.f32 %v2973_v14, %v973_v11  ;;  %v1043_v17 = vmul.f32 %v2976_v20, %v2330_v18 }
  0xa3   :  { %v614_v37 = vadd.f32 %v610_v7, %v579_v9  ;;  %v881_v7 = vmax.f32 %v877_v1, 0.0  ;;  %v916_v32 = vmax.f32 %v912_v24, 0.0  ;;  %v855_v35 = vmul.f32 %v2974_v25, %v846_v62 }
  0xa4   :  { %v951_v9 = vmax.f32 %v947_v42, 0.0  ;;  %v1017_v58 = vadd.f32 %v2979_v47, %v1008_v31  ;;  %v986_v43 = vmax.f32 %v982_v6, 0.0  ;;  %v1052_v25 = vadd.f32 %v2981_v60, %v1043_v17 }
  0xa5   :  { %v649_v5 = vadd.f32 %v645_v4, %v614_v37  ;;  %v890_v23 = vmul.f32 %v2975_v29, %v881_v7  ;;  %v1078_v4 = vmul.f32 %v2980_v38, %v2330_v18  ;;  %v925_v46 = vmul.f32 %v2977_v53, %v916_v32 }
  0xa6   :  { %v1113_v14 = vmul.f32 %v2982_v30, %v2330_v18  ;;  %v960_v20 = vmul.f32 %v2978_v55, %v951_v9  ;;  %v1021_v29 = vmax.f32 %v1017_v58, 0.0  ;;  %v995_v47 = vmul.f32 %v2983_v27, %v986_v43 }
  0xa7   :  { %v684_v57 = vadd.f32 %v680_v22, %v649_v5  ;;  %v1087_v52 = vadd.f32 %v2984_v40, %v1078_v4  ;;  %v1056_v37 = vmax.f32 %v1052_v25, 0.0 }
  0xa8   :  { %v1122_v38 = vadd.f32 %v2102_v0, %v1113_v14  ;;  %v1030_v39 = vmul.f32 %v2062_v13, %v1021_v29  ;;  %v1155_v13 = vstv %s2665_s0 }
  0xa9   :  { %v719_v26 = vadd.f32 %v715_v12, %v684_v57  ;;  %v1091_v22 = vmax.f32 %v1087_v52, 0.0  ;;  %v1065_v45 = vmul.f32 %v2119_v16, %v1056_v37 }
  0xaa   :  { %v1126_v18 = vmax.f32 %v1122_v38, 0.0 }
  0xab   :  { %v754_v63 = vadd.f32 %v750_v56, %v719_v26  ;;  %v1100_v55 = vmul.f32 %v2940_v49, %v1091_v22 }
  0xac   :  { %v1135_v40 = vmul.f32 %v2944_v34, %v1126_v18 }
  0xad   :  { %v789_v3 = vadd.f32 %v785_v8, %v754_v63 }
  0xaf   :  { %v824_v2 = vadd.f32 %v820_v54, %v789_v3 }
  0xb1   :  { %v859_v21 = vadd.f32 %v855_v35, %v824_v2 }
  0xb3   :  { %v894_v48 = vadd.f32 %v890_v23, %v859_v21 }
  0xb5   :  { %v929_v36 = vadd.f32 %v925_v46, %v894_v48 }
  0xb7   :  { %v964_v53 = vadd.f32 %v960_v20, %v929_v36 }
  0xb9   :  { %v999_v60 = vadd.f32 %v995_v47, %v964_v53 }
  0xbb   :  { %v1034_v30 = vadd.f32 %v1030_v39, %v999_v60 }
  0xbd   :  { %v1069_v33 = vadd.f32 %v1065_v45, %v1034_v30 }
  0xbf   :  { %v1104_v19 = vadd.f32 %v1100_v55, %v1069_v33 }
  0xc1   :  { %v1139_v50 = vadd.f32 %v1135_v40, %v1104_v19 }
  0xc3   :  { %v1146_v27 = vsel %vm1142_vm0, %v1139_v50, 0.0 }
  0xc4   :  { %1147 = vadd.xlane.f32.xlu0 %v1146_v27 }
  0xdd   :  { %v1145_v0 = vpop.xlane.xlu0 %1144 }
  0xde   :  { %v1156_v5 = vadd.f32 %v1155_v13, %v1145_v0 }
  0xe0   :  { %v1324_v12 = vmul.f32 -1.442695, %v1156_v5 }
  0xe2   :  { %1328 = vpow2.f32 %v1324_v12 }
  0xec   :  { %v1329_v16 = vpop.eup %1328 }
  0xed   :  { %v1172_v15 = vadd.f32 1.0, %v1329_v16 }
  0xef   :  { %1330 = vrcp.f32 %v1172_v15 }
  0xf9   :  { %v1331_v49 = vpop.eup %1330 }
  0xfa   :  { %1185 = vst.msk [vmem:[#allocation3] sm:$0xff] %vm1184_vm1, %v1331_v49 }
  0xff   :  { %v1151_v34 = vpop.xlane.xlu1 %1150 }
 0x100   :  { %v1158_v10 = vadd.f32 %v1155_v13, %v1151_v34 }
 0x101   :  { %v1206_v28 = vld [vmem:[#allocation3] sm:$0x3] }
 0x102   :  { %v1326_v44 = vmul.f32 -1.442695, %v1158_v10  ;;  %1207 = vst [vmem:[%s2670_s5] sm:$0x3] %v1206_v28 }
 0x104   :  { %1332 = vpow2.f32 %v1326_v44 }
 0x10e   :  { %v1333_v1 = vpop.eup %1332 }
 0x10f   :  { %v1174_v57 = vadd.f32 1.0, %v1333_v1 }
 0x111   :  { %1334 = vrcp.f32 %v1174_v57 }
 0x11b   :  { %v1335_v56 = vpop.eup %1334 }
 0x12a   :  { %v1154_v51 = vpop.xlane.xlu1 %1153 }
 0x12b   :  { %v1159_v59 = vadd.f32 %v1155_v13, %v1154_v51 }
 0x12d   :  { %v1327_v61 = vmul.f32 -1.442695, %v1159_v59 }
 0x12f   :  { %1336 = vpow2.f32 %v1327_v61 }
 0x139   :  { %v1337_v24 = vpop.eup %1336 }
 0x13a   :  { %v1175_v26 = vadd.f32 1.0, %v1337_v24 }
 0x13c   :  { %1338 = vrcp.f32 %v1175_v26 }
 0x146   :  { %v1339_v8 = vpop.eup %1338 }
 0x151   :  { %v1148_v62 = vpop.xlane.xlu0 %1147 }
 0x152   :  { %v1157_v11 = vadd.f32 %v1155_v13, %v1148_v62 }
 0x154   :  { %v1325_v7 = vmul.f32 -1.442695, %v1157_v11 }
 0x156   :  { %1340 = vpow2.f32 %v1325_v7 }
 0x160   :  { %v1341_v63 = vpop.eup %1340 }
 0x161   :  { %v1173_v54 = vadd.f32 1.0, %v1341_v63 }
 0x163   :  { %1342 = vrcp.f32 %v1173_v54 }
 0x16d   :  { %v1343_v41 = vpop.eup %1342 }

</bundles_post_ra>
